<compile_context>
chip_gen: v6e
topology: v6e:2x2x1
jax: 0.10.0
libtpu: 0.0.40
codegen_flags: <defaults>
</compile_context>

<pallas_src>
import jax
import jax.numpy as jnp
from jax import lax
from jax.experimental import pallas as pl
from jax.experimental.pallas import tpu as pltpu


def _cb_layer(h, half, row_mask, col_mask):
    """CB_Layer in channel-last layout.  h = [x | y], shape (Np, 2*half).
    Returns cat([x + y_r, y + x_r], channel) = h + [y_r | x_r]."""
    x = h[:, :half]
    y = h[:, half:]
    xb = x.astype(jnp.bfloat16)
    yb = y.astype(jnp.bfloat16)
    # energy[i, j] = sum_c y[i, c] * x[j, c]   (== y^T @ x of the NCW reference)
    energy = lax.dot_general(yb, xb, (((1,), (1,)), ((), ())),
                             preferred_element_type=jnp.float32)
    e = jnp.exp(energy - jnp.max(energy, axis=-1, keepdims=True))
    if col_mask is not None:                    # drop padded key columns
        e = e * col_mask
    inv_row = pl.reciprocal(jnp.sum(e, axis=-1, keepdims=True), approx=True)
    if row_mask is not None:                    # drop padded query rows
        inv_row = inv_row * row_mask
    att = e * inv_row                                        # softmax(dim=-1)
    col_sum = jnp.sum(att, axis=0, keepdims=True)            # sum over dim=1 (NCW)
    att = att * pl.reciprocal(1e-9 + col_sum, approx=True)
    attb = att.astype(jnp.bfloat16)
    x_r = jnp.dot(attb, xb, preferred_element_type=jnp.float32)        # att @ x
    y_r = lax.dot_general(attb, yb, (((0,), (0,)), ((), ())),          # att^T @ y
                          preferred_element_type=jnp.float32)
    return h + jnp.concatenate([y_r, x_r], axis=-1)


def _make_kernel(n_valid, n_padded):
    need_mask = n_padded != n_valid

    def kernel(inp_ref, w1_ref, b1_ref, w2_ref, b2_ref,
               w5_ref, b5_ref, w6_ref, b6_ref, pf_ref, ap_ref):
        inp = inp_ref[0]                         # (Np, 8) = [x(3) | mp(3) | 0 pad]

        row_mask = col_mask = None
        if need_mask:
            row_mask = (lax.broadcasted_iota(jnp.int32, (n_padded, 1), 0)
                        < n_valid).astype(jnp.float32)
            col_mask = (lax.broadcasted_iota(jnp.int32, (1, n_padded), 1)
                        < n_valid).astype(jnp.float32)

        def dense(v, w_ref, b_ref):              # 1x1 conv + ReLU (bf16 MXU, f32 acc)
            z = jnp.dot(v.astype(jnp.bfloat16), w_ref[...],
                        preferred_element_type=jnp.float32) + b_ref[...]
            return jnp.maximum(z, 0.0)

        h1 = dense(inp, w1_ref, b1_ref)              # (Np, 128) = [x1 | emb1]
        pf1 = _cb_layer(h1, 64, row_mask, col_mask)  # pointfeat_1 (Np, 128)

        h2 = dense(h1, w2_ref, b2_ref)               # (Np, 256) = [x2 | emb2]
        pf2 = _cb_layer(h2, 128, row_mask, col_mask) # pointfeat_2 (Np, 256)

        x5 = dense(pf2, w5_ref, b5_ref)              # (Np, 512)
        x6 = dense(x5, w6_ref, b6_ref)               # (Np, 1024)

        if need_mask:                                # AvgPool1d over valid points
            ap = jnp.sum(x6 * row_mask, axis=0, keepdims=True) * (1.0 / n_valid)
        else:
            ap = jnp.mean(x6, axis=0, keepdims=True)

        pf_ref[0, :, 0:128] = pf1                    # lane-aligned slice stores
        pf_ref[0, :, 128:384] = pf2
        ap_ref[0] = ap

    return kernel


def ppfeat_forward(x, model_points, params):
    """x, model_points: (B, 3, N) float32 (PyTorch NCW).  Returns (B, 1408, N)."""
    B, cin, N = x.shape
    assert cin == 3
    n_pad = pl.cdiv(N, 8) * 8                        # sublane-align the point dim
    f32, bf16 = jnp.float32, jnp.bfloat16

    x_nc = jnp.transpose(x, (0, 2, 1))               # (B, N, 3)
    mp_nc = jnp.transpose(model_points, (0, 2, 1))   # (B, N, 3)
    inp = jnp.concatenate([x_nc, mp_nc], axis=-1)    # (B, N, 6)
    inp = jnp.pad(inp, ((0, 0), (0, n_pad - N), (0, 2)))   # (B, Np, 8)

    # conv1/m_conv1 fused into one block-diagonal (8,128) weight, conv2/m_conv2
    # into (128,256): half as many MXU launches, better array utilization.
    z3 = jnp.zeros((3, 64), f32)
    z64 = jnp.zeros((64, 128), f32)
    w1f = jnp.concatenate(
        [jnp.concatenate([params["w1"], z3], axis=1),
         jnp.concatenate([z3, params["wm1"]], axis=1),
         jnp.zeros((2, 128), f32)], axis=0).astype(bf16)          # (8, 128)
    b1f = jnp.concatenate([params["b1"], params["bm1"]], axis=1)  # (1, 128) f32
    w2f = jnp.concatenate(
        [jnp.concatenate([params["w2"], z64], axis=1),
         jnp.concatenate([z64, params["wm2"]], axis=1)], axis=0).astype(bf16)
    b2f = jnp.concatenate([params["b2"], params["bm2"]], axis=1)  # (1, 256) f32
    weights = (w1f, b1f, w2f, b2f,
               params["w5"].astype(bf16), params["b5"],
               params["w6"].astype(bf16), params["b6"])

    def full_spec(arr):
        nd = arr.ndim
        return pl.BlockSpec(arr.shape, lambda b, _n=nd: (0,) * _n)

    pf, ap = pl.pallas_call(
        _make_kernel(N, n_pad),
        out_shape=(jax.ShapeDtypeStruct((B, n_pad, 384), f32),
                   jax.ShapeDtypeStruct((B, 1, 1024), f32)),
        grid=(B,),
        in_specs=[pl.BlockSpec((1, n_pad, 8), lambda b: (b, 0, 0))]
                + [full_spec(w) for w in weights],
        out_specs=(pl.BlockSpec((1, n_pad, 384), lambda b: (b, 0, 0)),
                   pl.BlockSpec((1, 1, 1024), lambda b: (b, 0, 0))),
        compiler_params=pltpu.CompilerParams(
            dimension_semantics=("parallel",),       # batch axis feeds both TCs (v7x)
            vmem_limit_bytes=64 * 1024 * 1024),
    )(inp, *weights)

    # Layout-only epilogue in XLA: slice off point padding, broadcast the pooled
    # feature over points, concat to 1408 channels, transpose back to NCW.
    pf = jnp.transpose(pf[:, :N, :], (0, 2, 1))                    # (B, 384, N)
    ap = jnp.broadcast_to(jnp.transpose(ap, (0, 2, 1)), (B, 1024, N))
    return jnp.concatenate([pf, ap], axis=1)                       # (B, 1408, N)


def make_params(key):
    """Deterministic synthetic weights; W stored as (Cin, Cout), bias as (1, Cout)."""
    shapes = {"w1": (3, 64), "wm1": (3, 64),
              "w2": (64, 128), "wm2": (64, 128),
              "w5": (256, 512), "w6": (512, 1024)}
    params = {}
    keys = jax.random.split(key, 2 * len(shapes))
    for i, name in enumerate(sorted(shapes)):
        cin, cout = shapes[name]
        bound = 1.0 / (cin ** 0.5)
        params[name] = jax.random.uniform(keys[2 * i], (cin, cout),
                                          jnp.float32, -bound, bound)
        params["b" + name[1:]] = jax.random.uniform(keys[2 * i + 1], (1, cout),
                                                    jnp.float32, -bound, bound)
    return params


def ppfeat_ref(x, mp, params):
    """Pure-JAX reference mirroring the PyTorch NCW computation (default precision)."""
    def conv(v, w, b):
        return jnp.einsum('bcn,cd->bdn', v, w) + b.reshape(1, -1, 1)

    def cb(xc, yc):
        y_t = jnp.transpose(yc, (0, 2, 1))
        energy = jnp.einsum('bnc,bcm->bnm', y_t, xc)
        att = jax.nn.softmax(energy, axis=-1)
        att = att / (1e-9 + jnp.sum(att, axis=1, keepdims=True))
        x_r = jnp.einsum('bcj,bij->bci', xc, att)
        y_r = jnp.einsum('bci,bij->bcj', yc, att)
        return jnp.concatenate([xc + y_r, yc + x_r], axis=1)

    x1 = jax.nn.relu(conv(x, params["w1"], params["b1"]))
    e1 = jax.nn.relu(conv(mp, params["wm1"], params["bm1"]))
    pf1 = cb(x1, e1)
    x2 = jax.nn.relu(conv(x1, params["w2"], params["b2"]))
    e2 = jax.nn.relu(conv(e1, params["wm2"], params["bm2"]))
    pf2 = cb(x2, e2)
    x5 = jax.nn.relu(conv(pf2, params["w5"], params["b5"]))
    x6 = jax.nn.relu(conv(x5, params["w6"], params["b6"]))
    ap = jnp.broadcast_to(jnp.mean(x6, axis=2, keepdims=True), x6.shape)
    return jnp.concatenate([pf1, pf2, ap], axis=1)


if __name__ == "__main__":
    key = jax.random.PRNGKey(0)
    kp, kd = jax.random.split(key)
    params = make_params(kp)

    # Case 0: sublane-aligned point count; case 1: ragged N (exercises pad+mask).
    for case, (B, N) in enumerate([(2, 16), (2, 12)]):
        kx, kmp = jax.random.split(jax.random.fold_in(kd, case))
        x = jax.random.normal(kx, (B, 3, N), jnp.float32)
        mp = jax.random.normal(kmp, (B, 3, N), jnp.float32)

        out = jax.block_until_ready(ppfeat_forward(x, mp, params))
        assert out.shape == (B, 1408, N), out.shape

        ref = ppfeat_ref(x, mp, params)
        err = float(jnp.max(jnp.abs(out - ref)))
        if not bool(jnp.allclose(out, ref, rtol=1e-2, atol=1e-2)):
            raise SystemExit(f"mismatch (B={B}, N={N}): max_err={err}")
    print("KERNEL_OK")
</pallas_src>

<mosaic_0001>
module attributes {stable_mosaic.version = 11 : i64} {
  func.func @kernel(%arg0: i32, %arg1: memref<1x16x8xf32, #tpu.memory_space<vmem>>, %arg2: memref<8x128xbf16, #tpu.memory_space<vmem>>, %arg3: memref<1x128xf32, #tpu.memory_space<vmem>>, %arg4: memref<128x256xbf16, #tpu.memory_space<vmem>>, %arg5: memref<1x256xf32, #tpu.memory_space<vmem>>, %arg6: memref<256x512xbf16, #tpu.memory_space<vmem>>, %arg7: memref<1x512xf32, #tpu.memory_space<vmem>>, %arg8: memref<512x1024xbf16, #tpu.memory_space<vmem>>, %arg9: memref<1x1024xf32, #tpu.memory_space<vmem>>, %arg10: memref<1x16x384xf32, #tpu.memory_space<vmem>>, %arg11: memref<1x1x1024xf32, #tpu.memory_space<vmem>>) attributes {dimension_semantics = [#tpu.dimension_semantics<parallel>], iteration_bounds = array<i64: 2>, scalar_prefetch = 0 : i64, scratch_operands = 0 : i64, tpu.core_type = #tpu.core_type<tc>, window_params = [{transform_indices = @transform_0, window_bounds = array<i64: 1, 16, 8>}, {pipeline_mode = #tpu.pipeline_mode<synchronous>, transform_indices = @transform_1, window_bounds = array<i64: 8, 128>}, {pipeline_mode = #tpu.pipeline_mode<synchronous>, transform_indices = @transform_2, window_bounds = array<i64: 1, 128>}, {pipeline_mode = #tpu.pipeline_mode<synchronous>, transform_indices = @transform_3, window_bounds = array<i64: 128, 256>}, {pipeline_mode = #tpu.pipeline_mode<synchronous>, transform_indices = @transform_4, window_bounds = array<i64: 1, 256>}, {pipeline_mode = #tpu.pipeline_mode<synchronous>, transform_indices = @transform_5, window_bounds = array<i64: 256, 512>}, {pipeline_mode = #tpu.pipeline_mode<synchronous>, transform_indices = @transform_6, window_bounds = array<i64: 1, 512>}, {pipeline_mode = #tpu.pipeline_mode<synchronous>, transform_indices = @transform_7, window_bounds = array<i64: 512, 1024>}, {pipeline_mode = #tpu.pipeline_mode<synchronous>, transform_indices = @transform_8, window_bounds = array<i64: 1, 1024>}, {transform_indices = @transform_9, window_bounds = array<i64: 1, 16, 384>}, {transform_indices = @transform_10, window_bounds = array<i64: 1, 1, 1024>}]} {
    %c0 = arith.constant 0 : index
    %c0_0 = arith.constant 0 : index
    %c0_1 = arith.constant 0 : index
    %0 = vector.load %arg1[%c0, %c0_0, %c0_1] : memref<1x16x8xf32, #tpu.memory_space<vmem>>, vector<1x16x8xf32>
    %1 = vector.shape_cast %0 : vector<1x16x8xf32> to vector<16x8xf32>
    %2 = arith.truncf %1 : vector<16x8xf32> to vector<16x8xbf16>
    %c0_2 = arith.constant 0 : index
    %c0_3 = arith.constant 0 : index
    %3 = vector.load %arg2[%c0_2, %c0_3] : memref<8x128xbf16, #tpu.memory_space<vmem>>, vector<8x128xbf16>
    %cst = arith.constant dense<0.000000e+00> : vector<16x128xf32>
    %4 = tpu.matmul %2, %3, %cst {dimension_numbers = #tpu.dot_dimension_numbers<[1], [0], [0], [1], [0, 0, 1, 1], [], []>} : vector<16x8xbf16>, vector<8x128xbf16>, vector<16x128xf32> -> vector<16x128xf32>
    %c0_4 = arith.constant 0 : index
    %c0_5 = arith.constant 0 : index
    %5 = vector.load %arg3[%c0_4, %c0_5] : memref<1x128xf32, #tpu.memory_space<vmem>>, vector<1x128xf32>
    %6 = vector.broadcast %5 : vector<1x128xf32> to vector<16x128xf32>
    %7 = arith.addf %4, %6 : vector<16x128xf32>
    %cst_6 = arith.constant 0.000000e+00 : f32
    %8 = vector.broadcast %cst_6 : f32 to vector<16x128xf32>
    %9 = arith.maximumf %7, %8 : vector<16x128xf32>
    %10 = vector.extract_strided_slice %9 {offsets = [0, 0], sizes = [16, 64], strides = [1, 1]} : vector<16x128xf32> to vector<16x64xf32>
    %11 = vector.extract_strided_slice %9 {offsets = [0, 64], sizes = [16, 64], strides = [1, 1]} : vector<16x128xf32> to vector<16x64xf32>
    %12 = arith.truncf %10 : vector<16x64xf32> to vector<16x64xbf16>
    %13 = arith.truncf %11 : vector<16x64xf32> to vector<16x64xbf16>
    %cst_7 = arith.constant dense<0.000000e+00> : vector<16x16xf32>
    %14 = tpu.matmul %13, %12, %cst_7 {dimension_numbers = #tpu.dot_dimension_numbers<[1], [1], [0], [0], [0, 0, 1, 0], [], []>} : vector<16x64xbf16>, vector<16x64xbf16>, vector<16x16xf32> -> vector<16x16xf32>
    %cst_8 = arith.constant dense<0xFF800000> : vector<16xf32>
    %15 = vector.multi_reduction <maximumf>, %14, %cst_8 [1] : vector<16x16xf32> to vector<16xf32>
    %16 = vector.shape_cast %15 : vector<16xf32> to vector<16x1xf32>
    %17 = vector.broadcast %16 : vector<16x1xf32> to vector<16x16xf32>
    %18 = arith.subf %14, %17 : vector<16x16xf32>
    %19 = math.exp %18 : vector<16x16xf32>
    %cst_9 = arith.constant dense<0.000000e+00> : vector<16xf32>
    %20 = vector.multi_reduction <add>, %19, %cst_9 [1] : vector<16x16xf32> to vector<16xf32>
    %21 = vector.shape_cast %20 : vector<16xf32> to vector<16x1xf32>
    %22 = tpu.reciprocal %21 {approx = true} : vector<16x1xf32> -> vector<16x1xf32>
    %23 = vector.broadcast %22 : vector<16x1xf32> to vector<16x16xf32>
    %24 = arith.mulf %19, %23 : vector<16x16xf32>
    %cst_10 = arith.constant dense<0.000000e+00> : vector<16xf32>
    %25 = vector.multi_reduction <add>, %24, %cst_10 [0] : vector<16x16xf32> to vector<16xf32>
    %26 = vector.shape_cast %25 : vector<16xf32> to vector<1x16xf32>
    %cst_11 = arith.constant 9.99999971E-10 : f32
    %27 = vector.broadcast %cst_11 : f32 to vector<1x16xf32>
    %28 = arith.addf %27, %26 : vector<1x16xf32>
    %29 = tpu.reciprocal %28 {approx = true} : vector<1x16xf32> -> vector<1x16xf32>
    %30 = vector.broadcast %29 : vector<1x16xf32> to vector<16x16xf32>
    %31 = arith.mulf %24, %30 : vector<16x16xf32>
    %32 = arith.truncf %31 : vector<16x16xf32> to vector<16x16xbf16>
    %cst_12 = arith.constant dense<0.000000e+00> : vector<16x64xf32>
    %33 = tpu.matmul %32, %12, %cst_12 {dimension_numbers = #tpu.dot_dimension_numbers<[1], [0], [0], [1], [0, 0, 1, 1], [], []>} : vector<16x16xbf16>, vector<16x64xbf16>, vector<16x64xf32> -> vector<16x64xf32>
    %cst_13 = arith.constant dense<0.000000e+00> : vector<16x64xf32>
    %34 = tpu.matmul %32, %13, %cst_13 {dimension_numbers = #tpu.dot_dimension_numbers<[0], [0], [1], [1], [0, 1, 1, 1], [], []>} : vector<16x16xbf16>, vector<16x64xbf16>, vector<16x64xf32> -> vector<16x64xf32>
    %35 = tpu.concatenate %34, %33 in 1 : vector<16x64xf32>, vector<16x64xf32> -> vector<16x128xf32>
    %36 = arith.addf %9, %35 : vector<16x128xf32>
    %37 = arith.truncf %9 : vector<16x128xf32> to vector<16x128xbf16>
    %c0_14 = arith.constant 0 : index
    %c0_15 = arith.constant 0 : index
    %38 = vector.load %arg4[%c0_14, %c0_15] : memref<128x256xbf16, #tpu.memory_space<vmem>>, vector<128x256xbf16>
    %cst_16 = arith.constant dense<0.000000e+00> : vector<16x256xf32>
    %39 = tpu.matmul %37, %38, %cst_16 {dimension_numbers = #tpu.dot_dimension_numbers<[1], [0], [0], [1], [0, 0, 1, 1], [], []>} : vector<16x128xbf16>, vector<128x256xbf16>, vector<16x256xf32> -> vector<16x256xf32>
    %c0_17 = arith.constant 0 : index
    %c0_18 = arith.constant 0 : index
    %40 = vector.load %arg5[%c0_17, %c0_18] : memref<1x256xf32, #tpu.memory_space<vmem>>, vector<1x256xf32>
    %41 = vector.broadcast %40 : vector<1x256xf32> to vector<16x256xf32>
    %42 = arith.addf %39, %41 : vector<16x256xf32>
    %cst_19 = arith.constant 0.000000e+00 : f32
    %43 = vector.broadcast %cst_19 : f32 to vector<16x256xf32>
    %44 = arith.maximumf %42, %43 : vector<16x256xf32>
    %45 = vector.extract_strided_slice %44 {offsets = [0, 0], sizes = [16, 128], strides = [1, 1]} : vector<16x256xf32> to vector<16x128xf32>
    %46 = vector.extract_strided_slice %44 {offsets = [0, 128], sizes = [16, 128], strides = [1, 1]} : vector<16x256xf32> to vector<16x128xf32>
    %47 = arith.truncf %45 : vector<16x128xf32> to vector<16x128xbf16>
    %48 = arith.truncf %46 : vector<16x128xf32> to vector<16x128xbf16>
    %cst_20 = arith.constant dense<0.000000e+00> : vector<16x16xf32>
    %49 = tpu.matmul %48, %47, %cst_20 {dimension_numbers = #tpu.dot_dimension_numbers<[1], [1], [0], [0], [0, 0, 1, 0], [], []>} : vector<16x128xbf16>, vector<16x128xbf16>, vector<16x16xf32> -> vector<16x16xf32>
    %cst_21 = arith.constant dense<0xFF800000> : vector<16xf32>
    %50 = vector.multi_reduction <maximumf>, %49, %cst_21 [1] : vector<16x16xf32> to vector<16xf32>
    %51 = vector.shape_cast %50 : vector<16xf32> to vector<16x1xf32>
    %52 = vector.broadcast %51 : vector<16x1xf32> to vector<16x16xf32>
    %53 = arith.subf %49, %52 : vector<16x16xf32>
    %54 = math.exp %53 : vector<16x16xf32>
    %cst_22 = arith.constant dense<0.000000e+00> : vector<16xf32>
    %55 = vector.multi_reduction <add>, %54, %cst_22 [1] : vector<16x16xf32> to vector<16xf32>
    %56 = vector.shape_cast %55 : vector<16xf32> to vector<16x1xf32>
    %57 = tpu.reciprocal %56 {approx = true} : vector<16x1xf32> -> vector<16x1xf32>
    %58 = vector.broadcast %57 : vector<16x1xf32> to vector<16x16xf32>
    %59 = arith.mulf %54, %58 : vector<16x16xf32>
    %cst_23 = arith.constant dense<0.000000e+00> : vector<16xf32>
    %60 = vector.multi_reduction <add>, %59, %cst_23 [0] : vector<16x16xf32> to vector<16xf32>
    %61 = vector.shape_cast %60 : vector<16xf32> to vector<1x16xf32>
    %cst_24 = arith.constant 9.99999971E-10 : f32
    %62 = vector.broadcast %cst_24 : f32 to vector<1x16xf32>
    %63 = arith.addf %62, %61 : vector<1x16xf32>
    %64 = tpu.reciprocal %63 {approx = true} : vector<1x16xf32> -> vector<1x16xf32>
    %65 = vector.broadcast %64 : vector<1x16xf32> to vector<16x16xf32>
    %66 = arith.mulf %59, %65 : vector<16x16xf32>
    %67 = arith.truncf %66 : vector<16x16xf32> to vector<16x16xbf16>
    %cst_25 = arith.constant dense<0.000000e+00> : vector<16x128xf32>
    %68 = tpu.matmul %67, %47, %cst_25 {dimension_numbers = #tpu.dot_dimension_numbers<[1], [0], [0], [1], [0, 0, 1, 1], [], []>} : vector<16x16xbf16>, vector<16x128xbf16>, vector<16x128xf32> -> vector<16x128xf32>
    %cst_26 = arith.constant dense<0.000000e+00> : vector<16x128xf32>
    %69 = tpu.matmul %67, %48, %cst_26 {dimension_numbers = #tpu.dot_dimension_numbers<[0], [0], [1], [1], [0, 1, 1, 1], [], []>} : vector<16x16xbf16>, vector<16x128xbf16>, vector<16x128xf32> -> vector<16x128xf32>
    %70 = tpu.concatenate %69, %68 in 1 : vector<16x128xf32>, vector<16x128xf32> -> vector<16x256xf32>
    %71 = arith.addf %44, %70 : vector<16x256xf32>
    %72 = arith.truncf %71 : vector<16x256xf32> to vector<16x256xbf16>
    %c0_27 = arith.constant 0 : index
    %c0_28 = arith.constant 0 : index
    %73 = vector.load %arg6[%c0_27, %c0_28] : memref<256x512xbf16, #tpu.memory_space<vmem>>, vector<256x512xbf16>
    %cst_29 = arith.constant dense<0.000000e+00> : vector<16x512xf32>
    %74 = tpu.matmul %72, %73, %cst_29 {dimension_numbers = #tpu.dot_dimension_numbers<[1], [0], [0], [1], [0, 0, 1, 1], [], []>} : vector<16x256xbf16>, vector<256x512xbf16>, vector<16x512xf32> -> vector<16x512xf32>
    %c0_30 = arith.constant 0 : index
    %c0_31 = arith.constant 0 : index
    %75 = vector.load %arg7[%c0_30, %c0_31] : memref<1x512xf32, #tpu.memory_space<vmem>>, vector<1x512xf32>
    %76 = vector.broadcast %75 : vector<1x512xf32> to vector<16x512xf32>
    %77 = arith.addf %74, %76 : vector<16x512xf32>
    %cst_32 = arith.constant 0.000000e+00 : f32
    %78 = vector.broadcast %cst_32 : f32 to vector<16x512xf32>
    %79 = arith.maximumf %77, %78 : vector<16x512xf32>
    %80 = arith.truncf %79 : vector<16x512xf32> to vector<16x512xbf16>
    %c0_33 = arith.constant 0 : index
    %c0_34 = arith.constant 0 : index
    %81 = vector.load %arg8[%c0_33, %c0_34] : memref<512x1024xbf16, #tpu.memory_space<vmem>>, vector<512x1024xbf16>
    %cst_35 = arith.constant dense<0.000000e+00> : vector<16x1024xf32>
    %82 = tpu.matmul %80, %81, %cst_35 {dimension_numbers = #tpu.dot_dimension_numbers<[1], [0], [0], [1], [0, 0, 1, 1], [], []>} : vector<16x512xbf16>, vector<512x1024xbf16>, vector<16x1024xf32> -> vector<16x1024xf32>
    %c0_36 = arith.constant 0 : index
    %c0_37 = arith.constant 0 : index
    %83 = vector.load %arg9[%c0_36, %c0_37] : memref<1x1024xf32, #tpu.memory_space<vmem>>, vector<1x1024xf32>
    %84 = vector.broadcast %83 : vector<1x1024xf32> to vector<16x1024xf32>
    %85 = arith.addf %82, %84 : vector<16x1024xf32>
    %cst_38 = arith.constant 0.000000e+00 : f32
    %86 = vector.broadcast %cst_38 : f32 to vector<16x1024xf32>
    %87 = arith.maximumf %85, %86 : vector<16x1024xf32>
    %cst_39 = arith.constant dense<0.000000e+00> : vector<1024xf32>
    %88 = vector.multi_reduction <add>, %87, %cst_39 [0] : vector<16x1024xf32> to vector<1024xf32>
    %89 = vector.shape_cast %88 : vector<1024xf32> to vector<1x1024xf32>
    %cst_40 = arith.constant 1.600000e+01 : f32
    %90 = vector.broadcast %cst_40 : f32 to vector<1x1024xf32>
    %91 = arith.divf %89, %90 : vector<1x1024xf32>
    %c0_41 = arith.constant 0 : index
    %c0_42 = arith.constant 0 : index
    %c0_43 = arith.constant 0 : index
    %92 = vector.load %arg10[%c0_41, %c0_42, %c0_43] : memref<1x16x384xf32, #tpu.memory_space<vmem>>, vector<1x16x128xf32>
    %93 = vector.shape_cast %92 : vector<1x16x128xf32> to vector<16x128xf32>
    %94 = vector.shape_cast %36 : vector<16x128xf32> to vector<1x16x128xf32>
    tpu.vector_store %arg10[%c0_41, %c0_42, %c0_43], %94 {strides = array<i32>} : memref<1x16x384xf32, #tpu.memory_space<vmem>>, vector<1x16x128xf32>,
    %c0_44 = arith.constant 0 : index
    %c0_45 = arith.constant 0 : index
    %c128 = arith.constant 128 : index
    %95 = vector.load %arg10[%c0_44, %c0_45, %c128] : memref<1x16x384xf32, #tpu.memory_space<vmem>>, vector<1x16x256xf32>
    %96 = vector.shape_cast %95 : vector<1x16x256xf32> to vector<16x256xf32>
    %97 = vector.shape_cast %71 : vector<16x256xf32> to vector<1x16x256xf32>
    tpu.vector_store %arg10[%c0_44, %c0_45, %c128], %97 {strides = array<i32>} : memref<1x16x384xf32, #tpu.memory_space<vmem>>, vector<1x16x256xf32>,
    %c0_46 = arith.constant 0 : index
    %c0_47 = arith.constant 0 : index
    %c0_48 = arith.constant 0 : index
    %98 = vector.load %arg11[%c0_46, %c0_47, %c0_48] : memref<1x1x1024xf32, #tpu.memory_space<vmem>>, vector<1x1x1024xf32>
    %99 = vector.shape_cast %98 : vector<1x1x1024xf32> to vector<1x1024xf32>
    %100 = vector.shape_cast %91 : vector<1x1024xf32> to vector<1x1x1024xf32>
    tpu.vector_store %arg11[%c0_46, %c0_47, %c0_48], %100 {strides = array<i32>} : memref<1x1x1024xf32, #tpu.memory_space<vmem>>, vector<1x1x1024xf32>,
    return
  }
  func.func @transform_0(%arg0: i32) -> (i32, i32, i32) {
    %c0_i32 = arith.constant 0 : i32
    %c0_i32_0 = arith.constant 0 : i32
    %c0_i32_1 = arith.constant 0 : i32
    return %arg0, %c0_i32, %c0_i32_0 : i32, i32, i32
  }
  func.func @transform_1(%arg0: i32) -> (i32, i32) {
    %c0_i32 = arith.constant 0 : i32
    %c0_i32_0 = arith.constant 0 : i32
    %c0_i32_1 = arith.constant 0 : i32
    return %c0_i32, %c0_i32_0 : i32, i32
  }
  func.func @transform_2(%arg0: i32) -> (i32, i32) {
    %c0_i32 = arith.constant 0 : i32
    %c0_i32_0 = arith.constant 0 : i32
    %c0_i32_1 = arith.constant 0 : i32
    return %c0_i32, %c0_i32_0 : i32, i32
  }
  func.func @transform_3(%arg0: i32) -> (i32, i32) {
    %c0_i32 = arith.constant 0 : i32
    %c0_i32_0 = arith.constant 0 : i32
    %c0_i32_1 = arith.constant 0 : i32
    return %c0_i32, %c0_i32_0 : i32, i32
  }
  func.func @transform_4(%arg0: i32) -> (i32, i32) {
    %c0_i32 = arith.constant 0 : i32
    %c0_i32_0 = arith.constant 0 : i32
    %c0_i32_1 = arith.constant 0 : i32
    return %c0_i32, %c0_i32_0 : i32, i32
  }
  func.func @transform_5(%arg0: i32) -> (i32, i32) {
    %c0_i32 = arith.constant 0 : i32
    %c0_i32_0 = arith.constant 0 : i32
    %c0_i32_1 = arith.constant 0 : i32
    return %c0_i32, %c0_i32_0 : i32, i32
  }
  func.func @transform_6(%arg0: i32) -> (i32, i32) {
    %c0_i32 = arith.constant 0 : i32
    %c0_i32_0 = arith.constant 0 : i32
    %c0_i32_1 = arith.constant 0 : i32
    return %c0_i32, %c0_i32_0 : i32, i32
  }
  func.func @transform_7(%arg0: i32) -> (i32, i32) {
    %c0_i32 = arith.constant 0 : i32
    %c0_i32_0 = arith.constant 0 : i32
    %c0_i32_1 = arith.constant 0 : i32
    return %c0_i32, %c0_i32_0 : i32, i32
  }
  func.func @transform_8(%arg0: i32) -> (i32, i32) {
    %c0_i32 = arith.constant 0 : i32
    %c0_i32_0 = arith.constant 0 : i32
    %c0_i32_1 = arith.constant 0 : i32
    return %c0_i32, %c0_i32_0 : i32, i32
  }
  func.func @transform_9(%arg0: i32) -> (i32, i32, i32) {
    %c0_i32 = arith.constant 0 : i32
    %c0_i32_0 = arith.constant 0 : i32
    %c0_i32_1 = arith.constant 0 : i32
    return %arg0, %c0_i32, %c0_i32_0 : i32, i32, i32
  }
  func.func @transform_10(%arg0: i32) -> (i32, i32, i32) {
    %c0_i32 = arith.constant 0 : i32
    %c0_i32_0 = arith.constant 0 : i32
    %c0_i32_1 = arith.constant 0 : i32
    return %arg0, %c0_i32, %c0_i32_0 : i32, i32, i32
  }
}

</mosaic_0001>

<bundles_post_ra>
// kernel: tpu_custom_call.1
= control target key start
LH: loop header
LB: loop body
LE: loop exit
PB: predicated region body
PF: predicated region fallthrough
CT: control target
= control target key end

     0   :  { %16 = vsyncpa [#allocation3], 0  ;;  %s5012_s0 = inlined_call_operand.vmem [shape: f32[2,16,8], index: 0, kind: input, shape index: {}]   ;;  %s5013_s1 = inlined_call_operand.vmem [shape: bf16[8,128], index: 1, kind: input, shape index: {}]   ;;  %s5014_s2 = inlined_call_operand.vmem [shape: f32[1,128], index: 2, kind: input, shape index: {}]   ;;  %s5015_s3 = inlined_call_operand.hbm [shape: bf16[128,256], index: 3, kind: input, shape index: {}]   ;;  %s5016_s4 = inlined_call_operand.vmem [shape: f32[1,256], index: 4, kind: input, shape index: {}]   ;;  %s5017_s5 = inlined_call_operand.hbm [shape: bf16[256,512], index: 5, kind: input, shape index: {}]   ;;  %s5018_s6 = inlined_call_operand.vmem [shape: f32[1,512], index: 6, kind: input, shape index: {}]   ;;  %s5019_s7 = inlined_call_operand.hbm [shape: bf16[512,1024], index: 7, kind: input, shape index: {}]   ;;  %s5020_s8 = inlined_call_operand.vmem [shape: f32[1,1024], index: 8, kind: input, shape index: {}]   ;;  %s5021_s9 = inlined_call_operand.hbm [shape: f32[2,16,384], index: 9, kind: output, shape index: {0}]   ;;  %s5022_s10 = inlined_call_operand.hbm [shape: f32[2,1,1024], index: 10, kind: output, shape index: {1}]  }
   0x1   :  { %17 = vsyncpa [#allocation6], 0 }
   0x2   :  { %18 = vsyncpa [#allocation4], 0 }
   0x3   :  { %20 = vsyncpa [#allocation4 + $0x1], 0 }
   0x4   :  { %21 = vsyncpa [#allocation10], 0 }
   0x5   :  { %23 = vsyncpa [#allocation10 + $0x1], 0  ;;  %s4657_s13 = smov 0   ;;  %s4659_s14 = smov 0  }
   0x6   :  { %s4661_s15 = smov 0   ;;  %s4663_s16 = smov 0  }
   0x7 LB: > { %5025 = sst [smem:[#allocation15_spill]] %s4578_s15  ;;  %s4678_s17 = sadd.s32 4294967295, %s4582_s16   ;;  %s4582_s16 = sphi %s4663_s16, %s5040_s16   ;;  %s4578_s15 = sphi %s4661_s15, %s5037_s15   ;;  %s4574_s14 = sphi %s4659_s14, %s5039_s14   ;;  %s4570_s13 = sphi %s4657_s13, %s5038_s13  }
   0x8   : > { %s3756_s18 = sadd.s32 4294967294, %s4582_s16   ;;  %s4682_s19 = sadd.s32 1, %s4582_s16  }
   0x9   : > { %s230_s20 = sadd.s32 1, %s4578_s15  ;;  %s227_s21 = ssub.s32 %s4582_s16, %s4682_s19 }
   0xa   : > { %p240_p0 = scmp.ne.s32.totalorder %s4578_s15, %s4574_s14  ;;  %p228_p1 = scmp.eq.s32.totalorder %s227_s21, 0 }
   0xb   : > { %p241_p2 = scmp.eq.s32.totalorder %s4678_s17, 1  ;;  %p246_p3 = scmp.ne.s32.totalorder %s4574_s14, %s4570_s13 }
   0xc   : > { %p247_p4 = scmp.eq.s32.totalorder %s3756_s18, 1  ;;  %p3757_p7 = scmp.ge.s32.totalorder %s4582_s16, 1 }
   0xd   : > { %s4693_s22 = scalar_select %p228_p1, %s4578_s15, %s230_s20  }
   0xe   : > { %p4695_p5 = por %p241_p2, %p240_p0  ;;  %p4699_p6 = por %p247_p4, %p246_p3 }
   0xf   : > { %5026 = sst [smem:[#allocation16_spill]] %s4693_s22  ;;  %p280_p8 = scmp.lt.s32.totalorder %s4582_s16, 3 }
  0x10   : > { %s5028_s24 = scalar_select %p4699_p6, 1, 0 }
  0x11   : > { %p5023_p9 = scmp.eq.s32.totalorder %s4678_s17, 0  ;;  %p4706_p10 = pnand %p3757_p7, %p280_p8 }
  0x12   : > { %s4584_s26 = smov [#allocation5]   ;;  %s4585_s29 = smov [#allocation2]  }
  0x13   : > { %s314_s27 = sshll.u32 %s4584_s26, 4  ;;  %p4194_p11 = pneg %p4706_p10  ;;  %s315_s27 = int_to_ptr.vmem [resolvable:$true] %s314_s27 }
  0x14   : > { %s298_s30 = sshll.u32 %s4585_s29, 4  ;;  %s4417_s11 = scalar_lea.vmem %s315_s27, 8192  ;;  %s299_s30 = int_to_ptr.vmem [resolvable:$true] %s298_s30 }
  0x15   : > { %p4714_p12 = pnand %p5023_p9, %p4194_p11  ;;  %p4418_p0 = scmp.ne.s32.totalorder %s315_s27, %s4417_s11 }
  0x16   : > { %p4425_p3 = scmp.lt.s32.totalorder %s315_s27, %s315_s27  ;;  %p4426_p4 = scmp.lt.s32.totalorder %s4417_s11, %s4417_s11 }
  0x17   : > { %p4408_p13 = pneg %p4714_p12 }
  0x18   : > { %p4427_p7 = por %p4426_p4, %p4425_p3 }
  0x19   : > { %p4420_p1 = pnand %p4418_p0, %p4408_p13 }
  0x1b   : > { %p4421_p2 = pneg %p4420_p1 }
  0x1d   : > { %p4428_p8 = pnand %p4427_p7, %p4421_p2 }
  0x1f   : > { %4431 = shalt.err (!%p4428_p8)
}
  0x20   : > { %s4586_s12 = smov 256   ;;  %s4587_s18 = smov 16  }
  0x21   : > { %4200 = dma.hbm_to_vmem [thread:$0]  (!%p4714_p12), %s5017_s5, 8192, %s315_s27, [#allocation6], %s4586_s12, %s4586_s12, %s4587_s18  }
  0x22   : > { %s4443_s26 = scalar_lea.vmem %s299_s30, 2048  ;;  %p4451_p9 = scmp.lt.s32.totalorder %s299_s30, %s299_s30 }
  0x23   : > { %p4444_p11 = scmp.ne.s32.totalorder %s299_s30, %s4443_s26  ;;  %p4452_p6 = scmp.lt.s32.totalorder %s4443_s26, %s4443_s26 }
  0x25   : > { %p4446_p0 = pnand %p4444_p11, %p4408_p13  ;;  %p4453_p3 = por %p4452_p6, %p4451_p9 }
  0x27   : > { %p4447_p1 = pneg %p4446_p0 }
  0x29   : > { %p4454_p2 = pnand %p4453_p3, %p4447_p1 }
  0x2b   : > { %4457 = shalt.err (!%p4454_p2)
}
  0x2c   : > { %s4588_s29 = smov 128   ;;  %s4589_s11 = smov 8  }
  0x2d   : > { %4197 = dma.hbm_to_vmem [thread:$0]  (!%p4714_p12), %s5015_s3, 2048, %s299_s30, [#allocation3], %s4588_s29, %s4588_s29, %s4589_s11  }
  0x2e   : > { %s4590_s27 = smov [#allocation7]  }
  0x2f   : > { %s330_s12 = sshll.u32 %s4590_s27, 4  ;;  %s331_s12 = int_to_ptr.vmem [resolvable:$true] %s330_s12 }
  0x30   : > { %s4469_s18 = scalar_lea.vmem %s331_s12, 32768  ;;  %p4477_p9 = scmp.lt.s32.totalorder %s331_s12, %s331_s12 }
  0x31   : > { %p4470_p4 = scmp.ne.s32.totalorder %s331_s12, %s4469_s18  ;;  %p4478_p8 = scmp.lt.s32.totalorder %s4469_s18, %s4469_s18 }
  0x33   : > { %p4472_p7 = pnand %p4470_p4, %p4408_p13  ;;  %p4479_p11 = por %p4478_p8, %p4477_p9 }
  0x35   : > { %p4473_p6 = pneg %p4472_p7 }
  0x37   : > { %p4480_p0 = pnand %p4479_p11, %p4473_p6 }
  0x39   : > { %4483 = shalt.err (!%p4480_p0)
}
  0x3a   : > { %s4591_s20 = smov 512   ;;  %s4592_s21 = smov 32  }
  0x3b   : > { %4203 = dma.hbm_to_vmem [thread:$0]  (!%p4714_p12), %s5019_s7, 32768, %s331_s12, [#allocation6], %s4591_s20, %s4591_s20, %s4592_s21  }
  0x3c   : > { %357 = sbr.rel (%p4706_p10) target bundleno = 2668 (0xa6c), region = 56  ;;  %p5031_p1 = scmp.eq.s32.totalorder (!%p4706_p10), %s4678_s17, 0 }
  0x41   : > { %4553 = dma.done.wait (%p5031_p1), [#allocation3], 2048   ;;  %p5032_p13 = pmov %p5031_p1 }
  0x42   : > { %p5033_p3 = pmov %p5031_p1 }
  0x43   : > { %4555 = vsyncadd (%p5032_p13), [#allocation3], 4294965248 }
  0x44   : > { %4557 = dma.done.wait (%p5033_p3), [#allocation6], 40960   ;;  %p5034_p2 = pmov %p5031_p1 }
  0x45   : > { %p408_p4 = scmp.lt.s32.totalorder %s4678_s17, 1  ;;  %v4593_v0 = vmov 0.0   ;;  %vm4594_vm0 = vmmov 0   ;;  %vm429_vm1 = vcmask 1043456   ;;  %v417_v1 = vld [vmem:[%s5013_s1] sm:$0xf] }
  0x46   : > { %4559 = vsyncadd (%p5034_p2), [#allocation6], 4294926336  ;;  %4134 = vmatprep.subr.bf16.mxu0 %v4593_v0  ;;  %4136 = vmatprep.mubr.msk.bf16.mxu0 %vm4594_vm0, %v4593_v0  ;;  %v431_v4 = vsel %vm429_vm1, %v417_v1, 0  ;;  %vm425_vm2 = vcmask 64512   ;;  %v3769_v6 = vld [vmem:[%s5014_s2] ss:$0 sm:$0xff] }
  0x47   : > { %s409_s25 = scalar_select %p408_p4, %s4678_s17, 1  ;;  %4140 = vmatprep.subr.bf16.mxu1 %v4593_v0  ;;  %4142 = vmatprep.mubr.msk.bf16.mxu1 %vm4594_vm0, %v4593_v0  ;;  %vm480_vm3 = vcmask 523264   ;;  %vm528_vm4 = vcmask 130048   ;;  %v4268_v34 = vld [vmem:[#allocation2 + $0x74] ss:$8 sps:$4 sm:$0xff]   ;;  %v4596_v58 = vmov 0  }
  0x48   : > { %4135 = vmatpush3.bf16.msra.mxu0 %v431_v4  ;;  %s4595_s20 = smov 64   ;;  %v4266_v54 = vld [vmem:[#allocation2 + $0x70] ss:$8 sps:$4 sm:$0xff]   ;;  %v4271_v56 = vld [vmem:[#allocation2 + $0x64] ss:$8 sps:$4 sm:$0xff]   ;;  %s4850_s22 = sand.u32 1, %s4574_s14  }
  0x49   : > { %s4118_s28 = sshll.u32 %s409_s25, 4  ;;  %4146 = vmatprep.subr.bf16.mxu0 %v4593_v0  ;;  %v4269_v57 = vld [vmem:[#allocation2 + $0x60] ss:$8 sps:$4 sm:$0xff]   ;;  %v4274_v59 = vld [vmem:[#allocation2 + $0x54] ss:$8 sps:$4 sm:$0xff]   ;;  %s4176_s25 = smul.u32 48, %s4850_s22 }
  0x4a   : > { %s412_s29 = scalar_lea.vmem %s5012_s0, %s4118_s28  ;;  %v4272_v60 = vld [vmem:[#allocation2 + $0x50] ss:$8 sps:$4 sm:$0xff]   ;;  %v4277_v61 = vld [vmem:[#allocation2 + $0x44] ss:$8 sps:$4 sm:$0xff]   ;;  %v4275_v62 = vld [vmem:[#allocation2 + $0x40] ss:$8 sps:$4 sm:$0xff]  }
  0x4b   : > { %v414_v2 = vld [vmem:[%s412_s29] sm:$0xff]  ;;  %v415_v3 = vld [vmem:[%s412_s29 + $0x8] sm:$0xff]  ;;  %v4280_v63 = vld [vmem:[#allocation2 + $0x34] ss:$8 sps:$4 sm:$0xff]   ;;  %s4856_s28 = scalar_lea.vmem [#allocation8], %s4176_s25  ;;  %s4177_s11 = smul.u32 768, %s4678_s17 }
  0x4c   : > { %v416_v5 = vpack.c.bf16 %v415_v3, %v414_v2  ;;  %v4278_v1 = vld [vmem:[#allocation2 + $0x30] ss:$8 sps:$4 sm:$0xff]   ;;  %v4283_v2 = vld [vmem:[#allocation2 + $0x24] ss:$8 sps:$4 sm:$0xff]   ;;  %v4281_v3 = vld [vmem:[#allocation2 + $0x20] ss:$8 sps:$4 sm:$0xff]  }
  0x4d   : > { %v4286_v4 = vld [vmem:[#allocation2 + $0x14] ss:$8 sps:$4 sm:$0xff]   ;;  %s3617_s29 = sshll.u32 %s4856_s28, 4  ;;  %s4928_s18 = scalar_lea.hbm %s5021_s9, %s4177_s11  ;;  %s4922_s29 = int_to_ptr.vmem [resolvable:$true] %s3617_s29 }
  0x4e   : > { %4137 = vmatmul.mubr.msk.bf16.vlgmr.msra.gmra.mxu0 %vm425_vm2, %v416_v5  ;;  %v4284_v5 = vld [vmem:[#allocation2 + $0x10] ss:$8 sps:$4 sm:$0xff]   ;;  %s4484_s21 = scalar_lea.vmem %s4922_s29, 768  ;;  %s4597_s15 = smov [#allocation8]  }
  0x4f   : > { %4148 = vmatprep.mubr.msk.bf16.mxu0 %vm4594_vm0, %v4593_v0  ;;  %p4485_p10 = scmp.ne.s32.totalorder %s4922_s29, %s4484_s21  ;;  %s4488_s25 = sshll.u32 %s4597_s15, 4  ;;  %s4489_s25 = int_to_ptr.vmem [resolvable:$false] %s4488_s25 }
  0x50   : > { %p4491_p6 = scmp.lt.s32.totalorder %s4922_s29, %s4489_s25 }
  0x51   : > { %p4486_p12 = pnand %p4485_p10, %p4695_p5 }
  0x53   : > { %p4487_p7 = pneg %p4486_p12 }
 0x10e   : > { %v467_v7 = vpop.f32.mrf.mxu0 }
 0x10f   : > { %v4774_v9 = vadd.f32 %v3769_v6, %v467_v7  ;;  %v4287_v7 = vld [vmem:[#allocation2] ss:$8 sps:$4 sm:$0xff]  }
 0x110   : > { %v4138_v8 = vpop.f32.mrf.mxu0 }
 0x111   : > { %v474_v13 = vmax.f32 %v4774_v9, 0.0 }
 0x112   : > { %v470_v10 = vpop.f32.mrf.mxu0 }
 0x113   : > { %v4776_v11 = vadd.f32 %v3769_v6, %v470_v10  ;;  %v4289_v6 = vld [vmem:[#allocation2 + $0x4] ss:$8 sps:$4 sm:$0xff]  }
 0x114   : > { %v4139_v12 = vpop.f32.mrf.mxu0 }
 0x115   : > { %v475_v14 = vmax.f32 %v4776_v11, 0.0 }
 0x117   : > { %v4784_v15 = vpack.c.bf16 %v475_v14, %v474_v13 }
 0x119   : > { %478 = vrot.lane.b32.xlu0 %v4784_v15, %s4595_s20  ;;  %4147 = vmatpush3.bf16.msra.mxu0 %v4784_v15  ;;  %v485_v16 = vsel %vm480_vm3, %v4784_v15, 0 }
 0x11a   : > { %4141 = vmatpush3.bf16.xpose.msra.mxu1 %v485_v16  ;;  %790 = vmatprep.subr.bf16.mxu0 %v4268_v34 }
 0x11b   : > { %4152 = vmatprep.subr.bf16.mxu1 %v4593_v0 }
 0x18b   : > { %v479_v17 = vpop.permute.xlu0 %478 }
 0x18c   : > { %4143 = vmatmul.mubr.msk.bf16.vlgmr.msra.gmra.mxu1 %vm480_vm3, %v479_v17 }
 0x18d   : > { %4153 = vmatpush3.bf16.msra.mxu1 %v479_v17  ;;  %4154 = vmatprep.mubr.msk.bf16.mxu1 %vm4594_vm0, %v4593_v0 }
 0x18e   : > { %4158 = vmatprep.subr.bf16.mxu1 %v4593_v0 }
 0x24c   : > { %v521_v18 = vpop.f32.mrf.mxu1 }
 0x24d   : > { %v529_v19 = vsel %vm528_vm4, %v521_v18, -inf }
 0x24e   : > { %530 = vmax.xlane.f32.xlu0 %v529_v19  ;;  %v4144_v20 = vpop.f32.mrf.mxu1 }
 0x250   : > { %v524_v21 = vpop.f32.mrf.mxu1 }
 0x251   : > { %v532_v22 = vsel %vm528_vm4, %v524_v21, -inf }
 0x252   : > { %533 = vmax.xlane.f32.xlu1 %v532_v22  ;;  %v4145_v23 = vpop.f32.mrf.mxu1 }
 0x2d7   : > { %v531_v24 = vpop.xlane.xlu0 %530 }
 0x2d8   : > { %v535_v25 = vsub.f32 %v521_v18, %v531_v24  ;;  %v700_v18 = vlaneseq }
 0x2da   : > { %v537_v26 = vmul.f32 1.442695, %v535_v25  ;;  %v4809_v19 = vshrl.u32 %v700_v18, 7 }
 0x2db   : > { %v534_v27 = vpop.xlane.xlu1 %533 }
 0x2dc   : > { %4386 = vpow2.f32 %v537_v26  ;;  %v536_v28 = vsub.f32 %v524_v21, %v534_v27  ;;  %v4812_v20 = vsub.s32 0, %v4809_v19  ;;  %v4819_v23 = vsub.s32 1, %v4809_v19 }
 0x2de   : > { %v539_v29 = vmul.f32 1.442695, %v536_v28 }
 0x2e0   : > { %4388 = vpow2.f32 %v539_v29 }
 0x2e9   : > { %v4387_v30 = vpop.eup %4386 }
 0x2ea   : > { %v541_v31 = vsel %vm528_vm4, %v4387_v30, 0.0 }
 0x2eb   : > { %542 = vadd.xlane.f32.xlu1 %v541_v31 }
 0x2ed   : > { %v4389_v32 = vpop.eup %4388 }
 0x2ee   : > { %v544_v33 = vsel %vm528_vm4, %v4389_v32, 0.0 }
 0x2ef   : > { %545 = vadd.xlane.f32.xlu1 %v544_v33 }
 0x374   : > { %v543_v35 = vpop.xlane.xlu1 %542 }
 0x375   : > { %4390 = vrcp.f32 %v543_v35 }
 0x378   : > { %v546_v36 = vpop.xlane.xlu1 %545 }
 0x379   : > { %4392 = vrcp.f32 %v546_v36 }
 0x382   : > { %v4391_v37 = vpop.eup %4390 }
 0x383   : > { %v549_v38 = vmul.f32 %v4391_v37, %v4387_v30 }
 0x385   : > { %v551_v41 = vsel %vm528_vm4, %v549_v38, 0.0 }
 0x386   : > { %v4393_v39 = vpop.eup %4392 }
 0x387   : > { %v550_v40 = vmul.f32 %v4393_v39, %v4389_v32 }
 0x389   : > { %v552_v42 = vsel %vm528_vm4, %v550_v40, 0.0 }
 0x38a   : > { %v553_v43 = vadd.f32 %v552_v42, %v551_v41 }
 0x38c   : > { %v554_v44 = vrot.slane %v553_v43, 4 }
 0x38e   : > { %v555_v45 = vadd.f32 %v554_v44, %v553_v43 }
 0x390   : > { %v556_v46 = vrot.slane %v555_v45, 2 }
 0x392   : > { %v557_v47 = vadd.f32 %v556_v46, %v555_v45 }
 0x394   : > { %v558_v48 = vrot.slane %v557_v47, 1 }
 0x396   : > { %v559_v49 = vadd.f32 %v558_v48, %v557_v47 }
 0x398   : > { %v560_v50 = vadd.f32 1e-09, %v559_v49 }
 0x39a   : > { %4394 = vrcp.f32 %v560_v50 }
 0x3a7   : > { %v4395_v51 = vpop.eup %4394 }
 0x3a8   : > { %v562_v52 = vmul.f32 %v4395_v51, %v549_v38  ;;  %v563_v53 = vmul.f32 %v4395_v51, %v550_v40 }
 0x3aa   : > { %v564_v55 = vpack.c.bf16 %v563_v53, %v562_v52 }
 0x3ac   : > { %609 = vxpose.xlu1.c.b16.start.end [1/1] (short) (narrow) %v564_v55, 16  ;;  %4149 = vmatmul.mubr.msk.bf16.vlgmr.msra.gmra.mxu0 %vm528_vm4, %v564_v55 }
 0x3ad   : > { %791 = vmatpush1.bf16.msra.mxu0 %v4266_v54  ;;  %822 = vmatprep.mubr.bf16.mxu0 %v4596_v58 }
 0x3ae   : > { %792 = vmatprep.subr.bf16.mxu0 %v4271_v56 }
 0x3b1   : > { %793 = vmatpush1.bf16.msra.mxu0 %v4269_v57 }
 0x3b2   : > { %794 = vmatprep.subr.bf16.mxu0 %v4274_v59 }
 0x3b5   : > { %795 = vmatpush1.bf16.msra.mxu0 %v4272_v60 }
 0x3b6   : > { %796 = vmatprep.subr.bf16.mxu0 %v4277_v61 }
 0x3b9   : > { %797 = vmatpush1.bf16.msra.mxu0 %v4275_v62 }
 0x3ba   : > { %798 = vmatprep.subr.bf16.mxu0 %v4280_v63 }
 0x3bd   : > { %799 = vmatpush1.bf16.msra.mxu0 %v4278_v1 }
 0x3be   : > { %800 = vmatprep.subr.bf16.mxu0 %v4283_v2 }
 0x3c1   : > { %801 = vmatpush1.bf16.msra.mxu0 %v4281_v3 }
 0x3c2   : > { %802 = vmatprep.subr.bf16.mxu0 %v4286_v4 }
 0x3c5   : > { %803 = vmatpush1.bf16.msra.mxu0 %v4284_v5 }
 0x3c6   : > { %804 = vmatprep.subr.bf16.mxu0 %v4289_v6 }
 0x3c9   : > { %805 = vmatpush1.bf16.msra.mxu0 %v4287_v7 }
 0x3cc   : > { %823 = vmatmul.mubr.bf16.vlgmr.msra.gmra.mxu0 %v4784_v15  ;;  %v698_v15 = vld [vmem:[%s5016_s4] sm:$0x3] }
 0x3cd   : > { %v703_v21 = vrot.slane %v698_v15, %v4812_v20  ;;  %v707_v28 = vrot.slane %v698_v15, %v4819_v23 }
 0x40e   : > { %v617_v8 = vpop.trf.xlu1 }
 0x40f   : > { %4155 = vmatmul.mubr.msk.bf16.vlgmr.msra.gmra.mxu1 %vm528_vm4, %v617_v8 }
 0x410   : > { %4160 = vmatprep.mubr.msk.bf16.mxu1 %vm4594_vm0, %v4593_v0 }
 0x46c   : > { %v602_v10 = vpop.f32.mrf.mxu0 }
 0x46d   : > { %672 = vrot.lane.b32.xlu1 %v602_v10, %s4595_s20 }
 0x46e   : > { %v4150_v12 = vpop.f32.mrf.mxu0 }
 0x470   : > { %v605_v16 = vpop.f32.mrf.mxu0 }
 0x471   : > { %674 = vrot.lane.b32.xlu1 %v605_v16, %s4595_s20  ;;  %s3599_s20 = scalar_lea.sflag [#allocation4], %s4850_s22 }
 0x472   : > { %v4151_v17 = vpop.f32.mrf.mxu0 }
 0x48c   : > { %v824_v22 = vpop.f32.mrf.mxu0 }
 0x48d   : > { %v4821_v25 = vadd.f32 %v824_v22, %v703_v21 }
 0x48e   : > { %v826_v24 = vpop.f32.mrf.mxu0 }
 0x48f   : > { %v833_v30 = vmax.f32 %v4821_v25, 0.0  ;;  %v4834_v34 = vadd.f32 %v826_v24, %v707_v28  ;;  %v4292_v24 = vld [vmem:[#allocation5 + $0xe4] ss:$16 sps:$4 sm:$0xff]  }
 0x490   : > { %v828_v26 = vpop.f32.mrf.mxu0  ;;  %v1702_v25 = vld [vmem:[#allocation7 + $0x560] sm:$0xff] }
 0x491   : > { %v4823_v27 = vadd.f32 %v828_v26, %v703_v21  ;;  %v834_v36 = vmax.f32 %v4834_v34, 0.0  ;;  %v4293_v26 = vld [vmem:[#allocation5 + $0xe8] ss:$16 sps:$4 sm:$0xff]   ;;  %v1578_v34 = vld [vmem:[#allocation7 + $0x180] sm:$0xff] }
 0x492   : > { %v830_v29 = vpop.f32.mrf.mxu0 }
 0x493   : > { %v835_v31 = vmax.f32 %v4823_v27, 0.0  ;;  %v4828_v32 = vadd.f32 %v830_v29, %v707_v28  ;;  %v4295_v28 = vld [vmem:[#allocation5 + $0xec] ss:$16 sps:$4 sm:$0xff]  }
 0x494   : > { %v4301_v29 = vld [vmem:[#allocation5 + $0xcc] ss:$16 sps:$4 sm:$0xff]   ;;  %1475 = vmatprep.subr.bf16.mxu0 %v4295_v28  ;;  %v4370_v28 = vld [vmem:[#allocation5 + $0x144] ss:$16 sps:$4 sm:$0xff]  }
 0x495   : > { %v837_v33 = vpack.c.bf16 %v835_v31, %v833_v30  ;;  %v836_v35 = vmax.f32 %v4828_v32, 0.0  ;;  %1476 = vmatpush1.bf16.msra.mxu0 %v4293_v26  ;;  %v4362_v26 = vld [vmem:[#allocation5 + $0x160] ss:$16 sps:$4 sm:$0xff]  }
 0x496   : > { %1477 = vmatprep.subr.bf16.mxu0 %v4301_v29  ;;  %v4368_v29 = vld [vmem:[#allocation5 + $0x140] ss:$16 sps:$4 sm:$0xff]  }
 0x497   : > { %4159 = vmatpush3.bf16.xpose.msra.mxu1 %v837_v33  ;;  %v4843_v37 = vpack.c.bf16 %v836_v35, %v834_v36 }
 0x498   : > { %4164 = vmatprep.subr.bf16.mxu1 %v4593_v0 }
 0x49e   : > { %4161 = vmatmul.mubr.bf16.vlgmr.msra.gmra.mxu1 %v4843_v37 }
 0x49f   : > { %4165 = vmatpush3.bf16.msra.mxu1 %v837_v33  ;;  %4166 = vmatprep.mubr.msk.bf16.mxu1 %vm4594_vm0, %v4593_v0  ;;  %v4299_v33 = vld [vmem:[#allocation5 + $0xc8] ss:$16 sps:$4 sm:$0xff]  }
 0x4a0   : > { %4170 = vmatprep.subr.bf16.mxu1 %v4593_v0  ;;  %1478 = vmatpush1.bf16.msra.mxu0 %v4299_v33  ;;  %v4376_v33 = vld [vmem:[#allocation5 + $0x124] ss:$16 sps:$4 sm:$0xff]  }
 0x4cf   : > { %v663_v38 = vpop.f32.mrf.mxu1 }
 0x4d1   : > { %v4156_v39 = vpop.f32.mrf.mxu1 }
 0x4d2   : > { %v4305_v39 = vld [vmem:[#allocation5 + $0xa8] ss:$16 sps:$4 sm:$0xff]  }
 0x4d3   : > { %v666_v40 = vpop.f32.mrf.mxu1 }
 0x4d5   : > { %v4157_v41 = vpop.f32.mrf.mxu1 }
 0x4d6   : > { %v4311_v41 = vld [vmem:[#allocation5 + $0x88] ss:$16 sps:$4 sm:$0xff]  }
 0x4df   : > { %v673_v42 = vpop.permute.xlu1 %672 }
 0x4e0   : > { %v678_v43 = vsel %vm480_vm3, %v663_v38, %v673_v42  ;;  %v4307_v38 = vld [vmem:[#allocation5 + $0xac] ss:$16 sps:$4 sm:$0xff]  }
 0x4e1   : > { %v680_v44 = vadd.f32 %v678_v43, %v474_v13  ;;  %1479 = vmatprep.subr.bf16.mxu0 %v4307_v38  ;;  %v4325_v42 = vld [vmem:[#allocation5 + $0x4c] ss:$16 sps:$4 sm:$0xff]   ;;  %v4323_v43 = vld [vmem:[#allocation5 + $0x48] ss:$16 sps:$4 sm:$0xff]  }
 0x4e2   : > { %1480 = vmatpush1.bf16.msra.mxu0 %v4305_v39  ;;  %v4379_v38 = vld [vmem:[#allocation5 + $0x12c] ss:$16 sps:$4 sm:$0xff]   ;;  %v4374_v39 = vld [vmem:[#allocation5 + $0x120] ss:$16 sps:$4 sm:$0xff]  }
 0x4e3   : > { %3533 = vst [vmem:[%s4856_s28] sm:$0xff] %v680_v44  ;;  %v675_v45 = vpop.permute.xlu1 %674  ;;  %v4331_v44 = vld [vmem:[#allocation5 + $0x2c] ss:$16 sps:$4 sm:$0xff]  }
 0x4e4   : > { %v679_v46 = vsel %vm480_vm3, %v666_v40, %v675_v45  ;;  %v4313_v40 = vld [vmem:[#allocation5 + $0x8c] ss:$16 sps:$4 sm:$0xff]   ;;  %v4290_v45 = vld [vmem:[#allocation5 + $0xe0] ss:$16 sps:$4 sm:$0xff]  }
 0x4e5   : > { %v681_v47 = vadd.f32 %v679_v46, %v475_v14  ;;  %1481 = vmatprep.subr.bf16.mxu0 %v4313_v40  ;;  %v4298_v46 = vld [vmem:[#allocation5 + $0xc4] ss:$16 sps:$4 sm:$0xff]   ;;  %v4377_v40 = vld [vmem:[#allocation5 + $0x128] ss:$16 sps:$4 sm:$0xff]  }
 0x4e6   : > { %1482 = vmatpush1.bf16.msra.mxu0 %v4311_v41  ;;  %v4382_v41 = vld [vmem:[#allocation5 + $0x104] ss:$16 sps:$4 sm:$0xff]  }
 0x4e7   : > { %3534 = vst [vmem:[%s4856_s28 + $0x18] sm:$0xff] %v681_v47  ;;  %v4329_v47 = vld [vmem:[#allocation5 + $0x28] ss:$16 sps:$4 sm:$0xff]  }
 0x55e   : > { %v873_v48 = vpop.f32.mrf.mxu1 }
 0x55f   : > { %v880_v49 = vsel %vm528_vm4, %v873_v48, -inf }
 0x560   : > { %881 = vmax.xlane.f32.xlu0 %v880_v49  ;;  %v4162_v50 = vpop.f32.mrf.mxu1  ;;  %v4337_v49 = vld [vmem:[#allocation5 + $0xc] ss:$16 sps:$4 sm:$0xff]  }
 0x561   : > { %v4296_v50 = vld [vmem:[#allocation5 + $0xc0] ss:$16 sps:$4 sm:$0xff]  }
 0x562   : > { %v876_v51 = vpop.f32.mrf.mxu1 }
 0x563   : > { %v883_v9 = vsel %vm528_vm4, %v876_v51, -inf }
 0x564   : > { %884 = vmax.xlane.f32.xlu0 %v883_v9  ;;  %v4163_v13 = vpop.f32.mrf.mxu1  ;;  %v4335_v9 = vld [vmem:[#allocation5 + $0x8] ss:$16 sps:$4 sm:$0xff]  }
 0x565   : > { %v4343_v13 = vld [vmem:[#allocation5 + $0x1ec] ss:$16 sps:$4 sm:$0xff]  }
 0x5e9   : > { %v882_v52 = vpop.xlane.xlu0 %881 }
 0x5ea   : > { %v886_v53 = vsub.f32 %v873_v48, %v882_v52  ;;  %v4302_v52 = vld [vmem:[#allocation5 + $0xa0] ss:$16 sps:$4 sm:$0xff]  }
 0x5ec   : > { %v888_v54 = vmul.f32 1.442695, %v886_v53  ;;  %v4310_v53 = vld [vmem:[#allocation5 + $0x84] ss:$16 sps:$4 sm:$0xff]  }
 0x5ed   : > { %v885_v55 = vpop.xlane.xlu0 %884 }
 0x5ee   : > { %4396 = vpow2.f32 %v888_v54  ;;  %v887_v56 = vsub.f32 %v876_v51, %v885_v55  ;;  %v4304_v51 = vld [vmem:[#allocation5 + $0xa4] ss:$16 sps:$4 sm:$0xff]   ;;  %v4341_v54 = vld [vmem:[#allocation5 + $0x1e8] ss:$16 sps:$4 sm:$0xff]   ;;  %v4349_v55 = vld [vmem:[#allocation5 + $0x1cc] ss:$16 sps:$4 sm:$0xff]  }
 0x5f0   : > { %v890_v57 = vmul.f32 1.442695, %v887_v56  ;;  %v4308_v56 = vld [vmem:[#allocation5 + $0x80] ss:$16 sps:$4 sm:$0xff]  }
 0x5f2   : > { %4398 = vpow2.f32 %v890_v57  ;;  %v4316_v57 = vld [vmem:[#allocation5 + $0x64] ss:$16 sps:$4 sm:$0xff]  }
 0x5fb   : > { %v4397_v11 = vpop.eup %4396 }
 0x5fc   : > { %v892_v14 = vsel %vm528_vm4, %v4397_v11, 0.0 }
 0x5fd   : > { %893 = vadd.xlane.f32.xlu0 %v892_v14  ;;  %v4355_v14 = vld [vmem:[#allocation5 + $0x1ac] ss:$16 sps:$4 sm:$0xff]  }
 0x5ff   : > { %v4399_v58 = vpop.eup %4398 }
 0x600   : > { %v895_v59 = vsel %vm528_vm4, %v4399_v58, 0.0 }
 0x601   : > { %896 = vadd.xlane.f32.xlu0 %v895_v59  ;;  %v4322_v59 = vld [vmem:[#allocation5 + $0x44] ss:$16 sps:$4 sm:$0xff]  }
 0x686   : > { %v894_v60 = vpop.xlane.xlu0 %893 }
 0x687   : > { %4400 = vrcp.f32 %v894_v60  ;;  %v4353_v60 = vld [vmem:[#allocation5 + $0x1a8] ss:$16 sps:$4 sm:$0xff]  }
 0x68a   : > { %v897_v61 = vpop.xlane.xlu0 %896 }
 0x68b   : > { %4402 = vrcp.f32 %v897_v61  ;;  %v4361_v61 = vld [vmem:[#allocation5 + $0x18c] ss:$16 sps:$4 sm:$0xff]  }
 0x694   : > { %v4401_v62 = vpop.eup %4400 }
 0x695   : > { %v900_v63 = vmul.f32 %v4401_v62, %v4397_v11  ;;  %v4347_v11 = vld [vmem:[#allocation5 + $0x1c8] ss:$16 sps:$4 sm:$0xff]   ;;  %v4320_v62 = vld [vmem:[#allocation5 + $0x40] ss:$16 sps:$4 sm:$0xff]  }
 0x697   : > { %v902_v3 = vsel %vm528_vm4, %v900_v63, 0.0 }
 0x698   : > { %v4403_v1 = vpop.eup %4402 }
 0x699   : > { %v901_v2 = vmul.f32 %v4403_v1, %v4399_v58  ;;  %v4314_v58 = vld [vmem:[#allocation5 + $0x60] ss:$16 sps:$4 sm:$0xff]   ;;  %v4359_v1 = vld [vmem:[#allocation5 + $0x188] ss:$16 sps:$4 sm:$0xff]  }
 0x69b   : > { %v903_v4 = vsel %vm528_vm4, %v901_v2, 0.0 }
 0x69c   : > { %v904_v5 = vadd.f32 %v903_v4, %v902_v3  ;;  %v4326_v3 = vld [vmem:[#allocation5 + $0x20] ss:$16 sps:$4 sm:$0xff]   ;;  %v4334_v4 = vld [vmem:[#allocation5 + $0x4] ss:$16 sps:$4 sm:$0xff]  }
 0x69e   : > { %v905_v6 = vrot.slane %v904_v5, 4 }
 0x6a0   : > { %v906_v7 = vadd.f32 %v905_v6, %v904_v5  ;;  %v4365_v5 = vld [vmem:[#allocation5 + $0x168] ss:$16 sps:$4 sm:$0xff]   ;;  %v4373_v6 = vld [vmem:[#allocation5 + $0x14c] ss:$16 sps:$4 sm:$0xff]  }
 0x6a2   : > { %v907_v8 = vrot.slane %v906_v7, 2 }
 0x6a4   : > { %v908_v10 = vadd.f32 %v907_v8, %v906_v7  ;;  %v4332_v7 = vld [vmem:[#allocation5] ss:$16 sps:$4 sm:$0xff]   ;;  %v4340_v8 = vld [vmem:[#allocation5 + $0x1e4] ss:$16 sps:$4 sm:$0xff]  }
 0x6a6   : > { %v909_v12 = vrot.slane %v908_v10, 1 }
 0x6a8   : > { %v910_v16 = vadd.f32 %v909_v12, %v908_v10  ;;  %v4371_v10 = vld [vmem:[#allocation5 + $0x148] ss:$16 sps:$4 sm:$0xff]   ;;  %v4338_v12 = vld [vmem:[#allocation5 + $0x1e0] ss:$16 sps:$4 sm:$0xff]  }
 0x6aa   : > { %v911_v17 = vadd.f32 1e-09, %v910_v16  ;;  %v4346_v16 = vld [vmem:[#allocation5 + $0x1c4] ss:$16 sps:$4 sm:$0xff]  }
 0x6ac   : > { %4404 = vrcp.f32 %v911_v17  ;;  %v4344_v17 = vld [vmem:[#allocation5 + $0x1c0] ss:$16 sps:$4 sm:$0xff]  }
 0x6b9   : > { %v4405_v18 = vpop.eup %4404 }
 0x6ba   : > { %v913_v15 = vmul.f32 %v4405_v18, %v900_v63  ;;  %v914_v21 = vmul.f32 %v4405_v18, %v901_v2  ;;  %v4328_v63 = vld [vmem:[#allocation5 + $0x24] ss:$16 sps:$4 sm:$0xff]   ;;  %v4367_v2 = vld [vmem:[#allocation5 + $0x16c] ss:$16 sps:$4 sm:$0xff]  }
 0x6bb   : > { %v4352_v18 = vld [vmem:[#allocation5 + $0x1a4] ss:$16 sps:$4 sm:$0xff]  }
 0x6bc   : > { %v915_v22 = vpack.c.bf16 %v914_v21, %v913_v15  ;;  %v4350_v15 = vld [vmem:[#allocation5 + $0x1a0] ss:$16 sps:$4 sm:$0xff]   ;;  %v4358_v21 = vld [vmem:[#allocation5 + $0x184] ss:$16 sps:$4 sm:$0xff]  }
 0x6be   : > { %960 = vxpose.xlu0.c.b16.start.end [1/1] (short) (narrow) %v915_v22, 16  ;;  %4167 = vmatmul.mubr.msk.bf16.vlgmr.msra.gmra.mxu1 %vm528_vm4, %v915_v22  ;;  %v4356_v22 = vld [vmem:[#allocation5 + $0x180] ss:$16 sps:$4 sm:$0xff]  }
 0x6bf   : > { %4171 = vmatpush3.bf16.msra.mxu1 %v4843_v37  ;;  %4172 = vmatprep.mubr.msk.bf16.mxu1 %vm4594_vm0, %v4593_v0  ;;  %v4319_v37 = vld [vmem:[#allocation5 + $0x6c] ss:$16 sps:$4 sm:$0xff]   ;;  %v4317_v0 = vld [vmem:[#allocation5 + $0x68] ss:$16 sps:$4 sm:$0xff]  }
 0x6c0   : > { %1432 = vmatprep.subr.bf16.mxu1 %v4292_v24  ;;  %1483 = vmatprep.subr.bf16.mxu0 %v4319_v37  ;;  %v4364_v24 = vld [vmem:[#allocation5 + $0x164] ss:$16 sps:$4 sm:$0xff]   ;;  %v4385_v37 = vld [vmem:[#allocation5 + $0x10c] ss:$16 sps:$4 sm:$0xff]  }
 0x6c1   : > { %1484 = vmatpush1.bf16.msra.mxu0 %v4317_v0  ;;  %v4380_v0 = vld [vmem:[#allocation5 + $0x100] ss:$16 sps:$4 sm:$0xff]  }
 0x6c2   : > { %1485 = vmatprep.subr.bf16.mxu0 %v4325_v42  ;;  %v4383_v42 = vld [vmem:[#allocation5 + $0x108] ss:$16 sps:$4 sm:$0xff]  }
 0x6c5   : > { %1486 = vmatpush1.bf16.msra.mxu0 %v4323_v43  ;;  %v1586_v43 = vld [vmem:[#allocation7 + $0x1c0] sm:$0xff] }
 0x6c6   : > { %1487 = vmatprep.subr.bf16.mxu0 %v4331_v44  ;;  %v1590_v44 = vld [vmem:[#allocation7 + $0x1e0] sm:$0xff] }
 0x6c9   : > { %1488 = vmatpush1.bf16.msra.mxu0 %v4329_v47  ;;  %v3913_v47 = vcombine.high %v1586_v43, %v1590_v44 }
 0x6ca   : > { %1489 = vmatprep.subr.bf16.mxu0 %v4337_v49 }
 0x6cd   : > { %1490 = vmatpush1.bf16.msra.mxu0 %v4335_v9 }
 0x6ce   : > { %1491 = vmatprep.subr.bf16.mxu0 %v4343_v13 }
 0x6d1   : > { %1492 = vmatpush2.bf16.msra.mxu0 %v4341_v54 }
 0x6d2   : > { %1493 = vmatprep.subr.bf16.mxu0 %v4349_v55 }
 0x6d5   : > { %1494 = vmatpush2.bf16.msra.mxu0 %v4347_v11 }
 0x6d6   : > { %1495 = vmatprep.subr.bf16.mxu0 %v4355_v14  ;;  %v1582_v14 = vld [vmem:[#allocation7 + $0x1a0] sm:$0xff] }
 0x6d9   : > { %1496 = vmatpush2.bf16.msra.mxu0 %v4353_v60 }
 0x6da   : > { %1497 = vmatprep.subr.bf16.mxu0 %v4361_v61  ;;  %v3905_v61 = vcombine.high %v1578_v34, %v1582_v14 }
 0x6dd   : > { %1498 = vmatpush2.bf16.msra.mxu0 %v4359_v1  ;;  %v1574_v1 = vld [vmem:[#allocation7 + $0x160] sm:$0xff] }
 0x6de   : > { %1499 = vmatprep.subr.bf16.mxu0 %v4367_v2  ;;  %v1698_v2 = vld [vmem:[#allocation7 + $0x540] sm:$0xff] }
 0x6df   : > { %v4025_v27 = vcombine.high %v1698_v2, %v1702_v25 }
 0x6e1   : > { %1500 = vmatpush2.bf16.msra.mxu0 %v4365_v5  ;;  %v1566_v5 = vld [vmem:[#allocation7 + $0x120] sm:$0xff] }
 0x6e2   : > { %1501 = vmatprep.subr.bf16.mxu0 %v4373_v6  ;;  %v1690_v6 = vld [vmem:[#allocation7 + $0x500] sm:$0xff] }
 0x6e5   : > { %1502 = vmatpush2.bf16.msra.mxu0 %v4371_v10  ;;  %v4024_v10 = vcombine.low %v1698_v2, %v1702_v25  ;;  %v1634_v25 = vld [vmem:[#allocation7 + $0x340] sm:$0xff] }
 0x6e6   : > { %1503 = vmatprep.subr.bf16.mxu0 %v4379_v38  ;;  %v1674_v38 = vld [vmem:[#allocation7 + $0x480] sm:$0xff] }
 0x6e9   : > { %1504 = vmatpush2.bf16.msra.mxu0 %v4377_v40 }
 0x6ea   : > { %1505 = vmatprep.subr.bf16.mxu0 %v4385_v37 }
 0x6ed   : > { %1506 = vmatpush2.bf16.msra.mxu0 %v4383_v42  ;;  %v1538_v42 = vld [vmem:[#allocation7 + $0x40] sm:$0xff] }
 0x720   : > { %v968_v48 = vpop.trf.xlu0 }
 0x721   : > { %4173 = vmatmul.mubr.msk.bf16.vlgmr.msra.gmra.mxu1 %vm528_vm4, %v968_v48  ;;  %v1718_v48 = vld [vmem:[#allocation7 + $0x5e0] sm:$0xff] }
 0x722   : > { %1433 = vmatpush1.bf16.msra.mxu1 %v4290_v45  ;;  %v1714_v45 = vld [vmem:[#allocation7 + $0x5c0] sm:$0xff] }
 0x723   : > { %1434 = vmatprep.subr.bf16.mxu1 %v4298_v46  ;;  %v3912_v46 = vcombine.low %v1586_v43, %v1590_v44  ;;  %v4040_v49 = vcombine.low %v1714_v45, %v1718_v48  ;;  %v1542_v43 = vld [vmem:[#allocation7 + $0x60] sm:$0xff] }
 0x724   : > { %v1666_v44 = vld [vmem:[#allocation7 + $0x440] sm:$0xff] }
 0x726   : > { %1435 = vmatpush1.bf16.msra.mxu1 %v4296_v50  ;;  %v4041_v50 = vcombine.high %v1714_v45, %v1718_v48  ;;  %v1670_v45 = vld [vmem:[#allocation7 + $0x460] sm:$0xff]  ;;  %v3865_v48 = vcombine.high %v1538_v42, %v1542_v43 }
 0x727   : > { %1436 = vmatprep.subr.bf16.mxu1 %v4304_v51 }
 0x728   : > { %3151 = vmatprep.subr.bf16.mxu0 %v4041_v50  ;;  %v1530_v50 = vld [vmem:[#allocation7] sm:$0xff] }
 0x72a   : > { %1437 = vmatpush1.bf16.msra.mxu1 %v4302_v52 }
 0x72b   : > { %1438 = vmatprep.subr.bf16.mxu1 %v4310_v53 }
 0x72e   : > { %1439 = vmatpush1.bf16.msra.mxu1 %v4308_v56 }
 0x72f   : > { %1440 = vmatprep.subr.bf16.mxu1 %v4316_v57 }
 0x732   : > { %1441 = vmatpush1.bf16.msra.mxu1 %v4314_v58  ;;  %v1706_v58 = vld [vmem:[#allocation7 + $0x580] sm:$0xff] }
 0x733   : > { %1442 = vmatprep.subr.bf16.mxu1 %v4322_v59  ;;  %v1710_v59 = vld [vmem:[#allocation7 + $0x5a0] sm:$0xff] }
 0x736   : > { %1443 = vmatpush1.bf16.msra.mxu1 %v4320_v62  ;;  %v4033_v62 = vcombine.high %v1706_v58, %v1710_v59 }
 0x737   : > { %1444 = vmatprep.subr.bf16.mxu1 %v4328_v63  ;;  %v1570_v63 = vld [vmem:[#allocation7 + $0x140] sm:$0xff] }
 0x73a   : > { %1445 = vmatpush1.bf16.msra.mxu1 %v4326_v3  ;;  %v4032_v3 = vcombine.low %v1706_v58, %v1710_v59 }
 0x73b   : > { %1446 = vmatprep.subr.bf16.mxu1 %v4334_v4  ;;  %v3897_v4 = vcombine.high %v1570_v63, %v1574_v1 }
 0x73e   : > { %1447 = vmatpush1.bf16.msra.mxu1 %v4332_v7  ;;  %v1694_v7 = vld [vmem:[#allocation7 + $0x520] sm:$0xff] }
 0x73f   : > { %1448 = vmatprep.subr.bf16.mxu1 %v4340_v8  ;;  %v3896_v8 = vcombine.low %v1570_v63, %v1574_v1 }
 0x742   : > { %1449 = vmatpush2.bf16.msra.mxu1 %v4338_v12 }
 0x743   : > { %1450 = vmatprep.subr.bf16.mxu1 %v4346_v16  ;;  %v4017_v16 = vcombine.high %v1690_v6, %v1694_v7 }
 0x746   : > { %1451 = vmatpush2.bf16.msra.mxu1 %v4344_v17  ;;  %v1554_v17 = vld [vmem:[#allocation7 + $0xc0] sm:$0xff] }
 0x747   : > { %1452 = vmatprep.subr.bf16.mxu1 %v4352_v18  ;;  %v1558_v18 = vld [vmem:[#allocation7 + $0xe0] sm:$0xff] }
 0x748   : > { %v3880_v40 = vcombine.low %v1554_v17, %v1558_v18 }
 0x74a   : > { %1453 = vmatpush2.bf16.msra.mxu1 %v4350_v15  ;;  %v1682_v15 = vld [vmem:[#allocation7 + $0x4c0] sm:$0xff] }
 0x74b   : > { %1454 = vmatprep.subr.bf16.mxu1 %v4358_v21  ;;  %v1686_v21 = vld [vmem:[#allocation7 + $0x4e0] sm:$0xff] }
 0x74e   : > { %1455 = vmatpush2.bf16.msra.mxu1 %v4356_v22 }
 0x74f   : > { %1456 = vmatprep.subr.bf16.mxu1 %v4364_v24  ;;  %v4016_v24 = vcombine.low %v1690_v6, %v1694_v7  ;;  %v1626_v7 = vld [vmem:[#allocation7 + $0x300] sm:$0xff] }
 0x752   : > { %1457 = vmatpush2.bf16.msra.mxu1 %v4362_v26  ;;  %v3881_v26 = vcombine.high %v1554_v17, %v1558_v18 }
 0x753   : > { %1458 = vmatprep.subr.bf16.mxu1 %v4370_v28  ;;  %v4009_v28 = vcombine.high %v1682_v15, %v1686_v21 }
 0x756   : > { %1459 = vmatpush2.bf16.msra.mxu1 %v4368_v29  ;;  %v1546_v29 = vld [vmem:[#allocation7 + $0x80] sm:$0xff] }
 0x757   : > { %1460 = vmatprep.subr.bf16.mxu1 %v4376_v33  ;;  %v1550_v33 = vld [vmem:[#allocation7 + $0xa0] sm:$0xff] }
 0x758   : > { %v3873_v37 = vcombine.high %v1546_v29, %v1550_v33 }
 0x75a   : > { %1461 = vmatpush2.bf16.msra.mxu1 %v4374_v39  ;;  %v1678_v39 = vld [vmem:[#allocation7 + $0x4a0] sm:$0xff] }
 0x75b   : > { %1462 = vmatprep.subr.bf16.mxu1 %v4382_v41  ;;  %v4008_v41 = vcombine.low %v1682_v15, %v1686_v21  ;;  %v1618_v21 = vld [vmem:[#allocation7 + $0x2c0] sm:$0xff] }
 0x75e   : > { %1463 = vmatpush2.bf16.msra.mxu1 %v4380_v0  ;;  %v4001_v0 = vcombine.high %v1674_v38, %v1678_v39 }
 0x75f   : > { %3108 = vmatprep.subr.bf16.mxu1 %v3913_v47  ;;  %v4000_v47 = vcombine.low %v1674_v38, %v1678_v39 }
 0x77e   : > { %v953_v51 = vpop.f32.mrf.mxu1 }
 0x77f   : > { %v1021_v9 = vadd.f32 %v953_v51, %v834_v36  ;;  %v1534_v51 = vld [vmem:[#allocation7 + $0x20] sm:$0xff] }
 0x780   : > { %v4168_v13 = vpop.f32.mrf.mxu1 }
 0x781   : > { %3536 = vst [vmem:[%s4856_s28 + $0x10] sm:$0xff] %v1021_v9  ;;  %v1662_v13 = vld [vmem:[#allocation7 + $0x420] sm:$0xff] }
 0x782   : > { %v956_v52 = vpop.f32.mrf.mxu1 }
 0x783   : > { %v1023_v53 = vadd.f32 %v956_v52, %v836_v35  ;;  %v3864_v52 = vcombine.low %v1538_v42, %v1542_v43  ;;  %v1742_v43 = vld [vmem:[#allocation7 + $0x6a0] sm:$0xff] }
 0x784   : > { %v4169_v54 = vpop.f32.mrf.mxu1 }
 0x785   : > { %v1025_v55 = vpack.c.bf16 %v1023_v53, %v1021_v9  ;;  %3538 = vst [vmem:[%s4856_s28 + $0x28] sm:$0xff] %v1023_v53  ;;  %v1658_v9 = vld [vmem:[#allocation7 + $0x400] sm:$0xff]  ;;  %v3992_v53 = vcombine.low %v1666_v44, %v1670_v45  ;;  %v3857_v54 = vcombine.high %v1530_v50, %v1534_v51 }
 0x787   : > { %1464 = vmatprep.mubr.bf16.mxu1 %v1025_v55  ;;  %1507 = vmatprep.mubr.bf16.mxu0 %v1025_v55  ;;  %v3985_v55 = vcombine.high %v1658_v9, %v1662_v13 }
 0x7e1   : > { %v1013_v56 = vpop.f32.mrf.mxu1 }
 0x7e2   : > { %v1020_v57 = vadd.f32 %v1013_v56, %v833_v30  ;;  %v3904_v30 = vcombine.low %v1578_v34, %v1582_v14  ;;  %v1650_v56 = vld [vmem:[#allocation7 + $0x3c0] sm:$0xff]  ;;  %v3984_v14 = vcombine.low %v1658_v9, %v1662_v13 }
 0x7e3   : > { %v4174_v11 = vpop.f32.mrf.mxu1  ;;  %v1782_v34 = vld [vmem:[#allocation7 + $0x7e0] sm:$0xff] }
 0x7e4   : > { %3535 = vst [vmem:[%s4856_s28 + $0x8] sm:$0xff] %v1020_v57  ;;  %v1778_v11 = vld [vmem:[#allocation7 + $0x7c0] sm:$0xff] }
 0x7e5   : > { %v1016_v36 = vpop.f32.mrf.mxu1  ;;  %v4105_v59 = vcombine.high %v1778_v11, %v1782_v34  ;;  %v4104_v63 = vcombine.low %v1778_v11, %v1782_v34 }
 0x7e6   : > { %v1022_v32 = vadd.f32 %v1016_v36, %v835_v31  ;;  %v1562_v31 = vld [vmem:[#allocation7 + $0x100] sm:$0xff]  ;;  %v3856_v36 = vcombine.low %v1530_v50, %v1534_v51 }
 0x7e7   : > { %v4175_v35 = vpop.f32.mrf.mxu1  ;;  %v3889_v12 = vcombine.high %v1562_v31, %v1566_v5  ;;  %v3888_v22 = vcombine.low %v1562_v31, %v1566_v5  ;;  %v1734_v51 = vld [vmem:[#allocation7 + $0x660] sm:$0xff] }
 0x7e8   : > { %v1024_v60 = vpack.c.bf16 %v1022_v32, %v1020_v57  ;;  %3537 = vst [vmem:[%s4856_s28 + $0x20] sm:$0xff] %v1022_v32  ;;  %v1654_v57 = vld [vmem:[#allocation7 + $0x3e0] sm:$0xff]  ;;  %s4490_s28 = scalar_lea.vmem %s4489_s25, 1536 }
 0x7e9   : > { %v3977_v58 = vcombine.high %v1650_v56, %v1654_v57  ;;  %v1642_v32 = vld [vmem:[#allocation7 + $0x380] sm:$0xff]  ;;  %p4492_p9 = scmp.lt.s32.totalorder %s4490_s28, %s4484_s21 }
 0x7ea   : > { %1465 = vmatmul.mubr.bf16.vlgmr.msra.gmra.mxu1 %v1024_v60  ;;  %1508 = vmatmul.mubr.bf16.vlgmr.msra.gmra.mxu0 %v1024_v60  ;;  %v1646_v35 = vld [vmem:[#allocation7 + $0x3a0] sm:$0xff] }
 0x7eb   : > { %3109 = vmatpush1.bf16.msra.mxu1 %v3912_v46  ;;  %3152 = vmatpush1.bf16.msra.mxu0 %v4040_v49  ;;  %v3872_v46 = vcombine.low %v1546_v29, %v1550_v33  ;;  %v3993_v49 = vcombine.high %v1666_v44, %v1670_v45  ;;  %v1770_v60 = vld [vmem:[#allocation7 + $0x780] sm:$0xff]  ;;  %v3969_v1 = vcombine.high %v1642_v32, %v1646_v35  ;;  %p4493_p8 = por %p4492_p9, %p4491_p6 }
 0x7ec   : > { %3110 = vmatprep.subr.bf16.mxu1 %v3905_v61  ;;  %3153 = vmatprep.subr.bf16.mxu0 %v4033_v62  ;;  %v1774_v61 = vld [vmem:[#allocation7 + $0x7a0] sm:$0xff]  ;;  %v3976_v62 = vcombine.low %v1650_v56, %v1654_v57 }
 0x7ed   : > { %v4097_v2 = vcombine.high %v1770_v60, %v1774_v61  ;;  %v4096_v31 = vcombine.low %v1770_v60, %v1774_v61  ;;  %v1726_v57 = vld [vmem:[#allocation7 + $0x620] sm:$0xff]  ;;  %p4494_p11 = pnand %p4493_p8, %p4487_p7 }
 0x7ef   : > { %3111 = vmatpush1.bf16.msra.mxu1 %v3904_v30  ;;  %3154 = vmatpush1.bf16.msra.mxu0 %v4032_v3  ;;  %v1638_v30 = vld [vmem:[#allocation7 + $0x360] sm:$0xff] }
 0x7f0   : > { %3112 = vmatprep.subr.bf16.mxu1 %v3897_v4  ;;  %3155 = vmatprep.subr.bf16.mxu0 %v4025_v27  ;;  %v1762_v3 = vld [vmem:[#allocation7 + $0x740] sm:$0xff]  ;;  %v3968_v27 = vcombine.low %v1642_v32, %v1646_v35  ;;  %v3961_v5 = vcombine.high %v1634_v25, %v1638_v30  ;;  %v1719_v35 = vld [vmem:[#allocation7 + $0x5e8] sm:$0xff] }
 0x7f1   : > { %v1766_v4 = vld [vmem:[#allocation7 + $0x760] sm:$0xff] }
 0x7f2   : > { %v4089_v6 = vcombine.high %v1762_v3, %v1766_v4  ;;  %v4088_v17 = vcombine.low %v1762_v3, %v1766_v4 }
 0x7f3   : > { %3113 = vmatpush1.bf16.msra.mxu1 %v3896_v8  ;;  %3156 = vmatpush1.bf16.msra.mxu0 %v4024_v10  ;;  %v1630_v8 = vld [vmem:[#allocation7 + $0x320] sm:$0xff] }
 0x7f4   : > { %3114 = vmatprep.subr.bf16.mxu1 %v3889_v12  ;;  %3157 = vmatprep.subr.bf16.mxu0 %v4017_v16  ;;  %v1754_v10 = vld [vmem:[#allocation7 + $0x700] sm:$0xff]  ;;  %v3960_v16 = vcombine.low %v1634_v25, %v1638_v30  ;;  %v3953_v18 = vcombine.high %v1626_v7, %v1630_v8 }
 0x7f5   : > { %v1758_v12 = vld [vmem:[#allocation7 + $0x720] sm:$0xff] }
 0x7f6   : > { %v4081_v15 = vcombine.high %v1754_v10, %v1758_v12  ;;  %v4080_v29 = vcombine.low %v1754_v10, %v1758_v12 }
 0x7f7   : > { %3115 = vmatpush1.bf16.msra.mxu1 %v3888_v22  ;;  %3158 = vmatpush1.bf16.msra.mxu0 %v4016_v24  ;;  %v1622_v22 = vld [vmem:[#allocation7 + $0x2e0] sm:$0xff] }
 0x7f8   : > { %3116 = vmatprep.subr.bf16.mxu1 %v3881_v26  ;;  %3159 = vmatprep.subr.bf16.mxu0 %v4009_v28  ;;  %v1746_v24 = vld [vmem:[#allocation7 + $0x6c0] sm:$0xff]  ;;  %v3952_v28 = vcombine.low %v1626_v7, %v1630_v8  ;;  %v3945_v33 = vcombine.high %v1618_v21, %v1622_v22  ;;  %v3944_v39 = vcombine.low %v1618_v21, %v1622_v22 }
 0x7f9   : > { %v1750_v26 = vld [vmem:[#allocation7 + $0x6e0] sm:$0xff] }
 0x7fa   : > { %v4073_v38 = vcombine.high %v1746_v24, %v1750_v26 }
 0x7fb   : > { %3117 = vmatpush1.bf16.msra.mxu1 %v3880_v40  ;;  %3160 = vmatpush1.bf16.msra.mxu0 %v4008_v41  ;;  %v4072_v40 = vcombine.low %v1746_v24, %v1750_v26  ;;  %v1610_v41 = vld [vmem:[#allocation7 + $0x280] sm:$0xff] }
 0x7fc   : > { %3118 = vmatprep.subr.bf16.mxu1 %v3873_v37  ;;  %3161 = vmatprep.subr.bf16.mxu0 %v4001_v0  ;;  %v1614_v37 = vld [vmem:[#allocation7 + $0x2a0] sm:$0xff] }
 0x7fd   : > { %v1738_v0 = vld [vmem:[#allocation7 + $0x680] sm:$0xff]  ;;  %v3937_v42 = vcombine.high %v1610_v41, %v1614_v37  ;;  %v3936_v44 = vcombine.low %v1610_v41, %v1614_v37  ;;  %v1579_v41 = vld [vmem:[#allocation7 + $0x188] sm:$0xff] }
 0x7fe   : > { %v4064_v45 = vcombine.low %v1738_v0, %v1742_v43 }
 0x7ff   : > { %3119 = vmatpush1.bf16.msra.mxu1 %v3872_v46  ;;  %3162 = vmatpush1.bf16.msra.mxu0 %v4000_v47  ;;  %v4065_v46 = vcombine.high %v1738_v0, %v1742_v43  ;;  %v1602_v47 = vld [vmem:[#allocation7 + $0x240] sm:$0xff]  ;;  %v1707_v43 = vld [vmem:[#allocation7 + $0x588] sm:$0xff] }
 0x800   : > { %3120 = vmatprep.subr.bf16.mxu1 %v3865_v48  ;;  %3163 = vmatprep.subr.bf16.mxu0 %v3993_v49  ;;  %v1606_v48 = vld [vmem:[#allocation7 + $0x260] sm:$0xff] }
 0x801   : > { %v1730_v49 = vld [vmem:[#allocation7 + $0x640] sm:$0xff]  ;;  %v3929_v50 = vcombine.high %v1602_v47, %v1606_v48  ;;  %v3928_v9 = vcombine.low %v1602_v47, %v1606_v48 }
 0x802   : > { %v4056_v13 = vcombine.low %v1730_v49, %v1734_v51 }
 0x803   : > { %3121 = vmatpush1.bf16.msra.mxu1 %v3864_v52  ;;  %3164 = vmatpush1.bf16.msra.mxu0 %v3992_v53  ;;  %v4057_v52 = vcombine.high %v1730_v49, %v1734_v51  ;;  %v1594_v53 = vld [vmem:[#allocation7 + $0x200] sm:$0xff]  ;;  %v1571_v49 = vld [vmem:[#allocation7 + $0x148] sm:$0xff] }
 0x804   : > { %3122 = vmatprep.subr.bf16.mxu1 %v3857_v54  ;;  %3165 = vmatprep.subr.bf16.mxu0 %v3985_v55  ;;  %v1598_v54 = vld [vmem:[#allocation7 + $0x220] sm:$0xff] }
 0x805   : > { %v1722_v55 = vld [vmem:[#allocation7 + $0x600] sm:$0xff]  ;;  %v3921_v56 = vcombine.high %v1594_v53, %v1598_v54  ;;  %v3920_v11 = vcombine.low %v1594_v53, %v1598_v54 }
 0x806   : > { %v4048_v34 = vcombine.low %v1722_v55, %v1726_v57 }
 0x807   : > { %3123 = vmatpush1.bf16.msra.mxu1 %v3856_v36  ;;  %3166 = vmatpush1.bf16.msra.mxu0 %v3984_v14  ;;  %v4049_v36 = vcombine.high %v1722_v55, %v1726_v57  ;;  %v1587_v14 = vld [vmem:[#allocation7 + $0x1c8] sm:$0xff] }
 0x808   : > { %3124 = vmatprep.subr.bf16.mxu1 %v3977_v58  ;;  %3167 = vmatprep.subr.bf16.mxu0 %v4105_v59  ;;  %v1591_v58 = vld [vmem:[#allocation7 + $0x1e8] sm:$0xff] }
 0x809   : > { %v1715_v59 = vld [vmem:[#allocation7 + $0x5c8] sm:$0xff]  ;;  %v3915_v32 = vcombine.high %v1587_v14, %v1591_v58  ;;  %v3914_v60 = vcombine.low %v1587_v14, %v1591_v58 }
 0x80a   : > { %v4042_v61 = vcombine.low %v1715_v59, %v1719_v35  ;;  %v1563_v57 = vld [vmem:[#allocation7 + $0x108] sm:$0xff] }
 0x80b   : > { %3125 = vmatpush2.bf16.msra.mxu1 %v3976_v62  ;;  %3168 = vmatpush2.bf16.msra.mxu0 %v4104_v63  ;;  %v4043_v62 = vcombine.high %v1715_v59, %v1719_v35  ;;  %v1106_v63 = vsub.s32 3, %v4809_v19  ;;  %v1555_v35 = vld [vmem:[#allocation7 + $0xc8] sm:$0xff] }
 0x80c   : > { %3126 = vmatprep.subr.bf16.mxu1 %v3969_v1  ;;  %3169 = vmatprep.subr.bf16.mxu0 %v4097_v2  ;;  %v1102_v1 = vsub.s32 2, %v4809_v19  ;;  %v1090_v2 = vld [vmem:[%s5018_s6] sm:$0xf] }
 0x80d   : > { %v1099_v3 = vrot.slane %v1090_v2, %v4819_v23  ;;  %v1107_v4 = vrot.slane %v1090_v2, %v1106_v63 }
 0x80f   : > { %3127 = vmatpush2.bf16.msra.mxu1 %v3968_v27  ;;  %3170 = vmatpush2.bf16.msra.mxu0 %v4096_v31  ;;  %v1095_v27 = vrot.slane %v1090_v2, %v4812_v20  ;;  %v1103_v31 = vrot.slane %v1090_v2, %v1102_v1 }
 0x810   : > { %3128 = vmatprep.subr.bf16.mxu1 %v3961_v5  ;;  %3171 = vmatprep.subr.bf16.mxu0 %v4089_v6 }
 0x813   : > { %3129 = vmatpush2.bf16.msra.mxu1 %v3960_v16  ;;  %3172 = vmatpush2.bf16.msra.mxu0 %v4088_v17 }
 0x814   : > { %3130 = vmatprep.subr.bf16.mxu1 %v3953_v18  ;;  %3173 = vmatprep.subr.bf16.mxu0 %v4081_v15 }
 0x817   : > { %3131 = vmatpush2.bf16.msra.mxu1 %v3952_v28  ;;  %3174 = vmatpush2.bf16.msra.mxu0 %v4080_v29 }
 0x818   : > { %3132 = vmatprep.subr.bf16.mxu1 %v3945_v33  ;;  %3175 = vmatprep.subr.bf16.mxu0 %v4073_v38 }
 0x81b   : > { %3133 = vmatpush2.bf16.msra.mxu1 %v3944_v39  ;;  %3176 = vmatpush2.bf16.msra.mxu0 %v4072_v40 }
 0x81c   : > { %3134 = vmatprep.subr.bf16.mxu1 %v3937_v42  ;;  %3177 = vmatprep.subr.bf16.mxu0 %v4065_v46  ;;  %v1583_v42 = vld [vmem:[#allocation7 + $0x1a8] sm:$0xff] }
 0x81d   : > { %v3906_v53 = vcombine.low %v1579_v41, %v1583_v42 }
 0x81f   : > { %3135 = vmatpush2.bf16.msra.mxu1 %v3936_v44  ;;  %3178 = vmatpush2.bf16.msra.mxu0 %v4064_v45  ;;  %v1711_v44 = vld [vmem:[#allocation7 + $0x5a8] sm:$0xff] }
 0x820   : > { %3136 = vmatprep.subr.bf16.mxu1 %v3929_v50  ;;  %3179 = vmatprep.subr.bf16.mxu0 %v4057_v52  ;;  %v3907_v50 = vcombine.high %v1579_v41, %v1583_v42  ;;  %v4035_v51 = vcombine.high %v1707_v43, %v1711_v44  ;;  %v1703_v52 = vld [vmem:[#allocation7 + $0x568] sm:$0xff]  ;;  %v4034_v54 = vcombine.low %v1707_v43, %v1711_v44 }
 0x821   : > { %v1779_v42 = vld [vmem:[#allocation7 + $0x7c8] sm:$0xff] }
 0x822   : > { %v1783_v43 = vld [vmem:[#allocation7 + $0x7e8] sm:$0xff] }
 0x823   : > { %3137 = vmatpush2.bf16.msra.mxu1 %v3928_v9  ;;  %3180 = vmatpush2.bf16.msra.mxu0 %v4056_v13  ;;  %v1575_v9 = vld [vmem:[#allocation7 + $0x168] sm:$0xff] }
 0x824   : > { %3138 = vmatprep.subr.bf16.mxu1 %v3921_v56  ;;  %3181 = vmatprep.subr.bf16.mxu0 %v4049_v36  ;;  %v1699_v13 = vld [vmem:[#allocation7 + $0x548] sm:$0xff]  ;;  %v3899_v55 = vcombine.high %v1571_v49, %v1575_v9  ;;  %v3898_v14 = vcombine.low %v1571_v49, %v1575_v9 }
 0x825   : > { %v4027_v56 = vcombine.high %v1699_v13, %v1703_v52  ;;  %v1695_v36 = vld [vmem:[#allocation7 + $0x528] sm:$0xff]  ;;  %v4026_v58 = vcombine.low %v1699_v13, %v1703_v52 }
 0x826   : > { %v1643_v9 = vld [vmem:[#allocation7 + $0x388] sm:$0xff] }
 0x827   : > { %3139 = vmatpush2.bf16.msra.mxu1 %v3920_v11  ;;  %3182 = vmatpush2.bf16.msra.mxu0 %v4048_v34  ;;  %v1567_v11 = vld [vmem:[#allocation7 + $0x128] sm:$0xff] }
 0x828   : > { %3194 = vmatprep.subr.bf16.mxu1 %v3915_v32  ;;  %3237 = vmatprep.subr.bf16.mxu0 %v4043_v62  ;;  %v1691_v34 = vld [vmem:[#allocation7 + $0x508] sm:$0xff]  ;;  %v3891_v59 = vcombine.high %v1563_v57, %v1567_v11  ;;  %v3890_v2 = vcombine.low %v1563_v57, %v1567_v11 }
 0x829   : > { %v4019_v32 = vcombine.high %v1691_v34, %v1695_v36  ;;  %v1687_v62 = vld [vmem:[#allocation7 + $0x4e8] sm:$0xff] }
 0x82a   : > { %v1647_v13 = vld [vmem:[#allocation7 + $0x3a8] sm:$0xff] }
 0x82b   : > { %v1771_v52 = vld [vmem:[#allocation7 + $0x788] sm:$0xff] }
 0x82c   : > { %v1635_v11 = vld [vmem:[#allocation7 + $0x348] sm:$0xff] }
 0x8aa   : > { %v1466_v25 = vpop.f32.mrf.mxu1  ;;  %v1509_v30 = vpop.f32.mrf.mxu0 }
 0x8ab   : > { %v1467_v18 = vadd.f32 %v1466_v25, %v1095_v27  ;;  %v1510_v15 = vadd.f32 %v1509_v30, %v1103_v31  ;;  %v4018_v25 = vcombine.low %v1691_v34, %v1695_v36  ;;  %v1639_v34 = vld [vmem:[#allocation7 + $0x368] sm:$0xff] }
 0x8ac   : > { %v1468_v5 = vpop.f32.mrf.mxu1  ;;  %v1511_v6 = vpop.f32.mrf.mxu0  ;;  %v1763_v36 = vld [vmem:[#allocation7 + $0x748] sm:$0xff] }
 0x8ad   : > { %v1469_v10 = vadd.f32 %v1468_v5, %v1099_v3  ;;  %v1512_v12 = vadd.f32 %v1511_v6, %v1107_v4  ;;  %v1518_v37 = vmax.f32 %v1467_v18, 0.0  ;;  %v1520_v0 = vmax.f32 %v1510_v15, 0.0  ;;  %v1679_v5 = vld [vmem:[#allocation7 + $0x4a8] sm:$0xff] }
 0x8ae   : > { %v1470_v7 = vpop.f32.mrf.mxu1  ;;  %v1513_v8 = vpop.f32.mrf.mxu0  ;;  %v1671_v18 = vld [vmem:[#allocation7 + $0x468] sm:$0xff] }
 0x8af   : > { %v1471_v16 = vadd.f32 %v1470_v7, %v1095_v27  ;;  %v1514_v17 = vadd.f32 %v1513_v8, %v1103_v31  ;;  %v1519_v33 = vmax.f32 %v1469_v10, 0.0  ;;  %v1521_v38 = vmax.f32 %v1512_v12, 0.0  ;;  %v1551_v27 = vld [vmem:[#allocation7 + $0xa8] sm:$0xff] }
 0x8b0   : > { %v1472_v21 = vpop.f32.mrf.mxu1  ;;  %v1515_v22 = vpop.f32.mrf.mxu0  ;;  %v1675_v31 = vld [vmem:[#allocation7 + $0x488] sm:$0xff] }
 0x8b1   : > { %v1473_v24 = vadd.f32 %v1472_v21, %v1099_v3  ;;  %v1516_v26 = vadd.f32 %v1515_v22, %v1107_v4  ;;  %v1522_v28 = vmax.f32 %v1471_v16, 0.0  ;;  %v1524_v29 = vmax.f32 %v1514_v17, 0.0  ;;  %v1547_v4 = vld [vmem:[#allocation7 + $0x88] sm:$0xff] }
 0x8b2   : > { %v3875_v8 = vcombine.high %v1547_v4, %v1551_v27  ;;  %v4003_v10 = vcombine.high %v1675_v31, %v1679_v5  ;;  %v1539_v12 = vld [vmem:[#allocation7 + $0x48] sm:$0xff]  ;;  %v3874_v15 = vcombine.low %v1547_v4, %v1551_v27  ;;  %v4002_v21 = vcombine.low %v1675_v31, %v1679_v5 }
 0x8b3   : > { %v1523_v39 = vmax.f32 %v1473_v24, 0.0  ;;  %v1525_v40 = vmax.f32 %v1516_v26, 0.0  ;;  %v4901_v47 = vpack.c.bf16 %v1522_v28, %v1518_v37  ;;  %v4903_v48 = vpack.c.bf16 %v1524_v29, %v1520_v0  ;;  %v1543_v16 = vld [vmem:[#allocation7 + $0x68] sm:$0xff] }
 0x8b4   : > { %v1667_v17 = vld [vmem:[#allocation7 + $0x448] sm:$0xff]  ;;  %v3867_v22 = vcombine.high %v1539_v12, %v1543_v16 }
 0x8b5   : > { %v4897_v45 = vpack.c.bf16 %v1523_v39, %v1519_v33  ;;  %v4899_v46 = vpack.c.bf16 %v1525_v40, %v1521_v38  ;;  %v3995_v24 = vcombine.high %v1667_v17, %v1671_v18  ;;  %v1531_v26 = vld [vmem:[#allocation7 + $0x8] sm:$0xff]  ;;  %v3866_v38 = vcombine.low %v1539_v12, %v1543_v16 }
 0x8b6   : > { %v1535_v28 = vld [vmem:[#allocation7 + $0x28] sm:$0xff]  ;;  %v3994_v39 = vcombine.low %v1667_v17, %v1671_v18 }
 0x8b7   : > { %3140 = vmatprep.mubr.bf16.mxu1 %v4897_v45  ;;  %3183 = vmatprep.mubr.bf16.mxu0 %v4899_v46  ;;  %v1659_v29 = vld [vmem:[#allocation7 + $0x408] sm:$0xff]  ;;  %v3859_v40 = vcombine.high %v1531_v26, %v1535_v28  ;;  %v3858_v44 = vcombine.low %v1531_v26, %v1535_v28 }
 0x8b8   : > { %3141 = vmatmul.mubr.bf16.vlgmr.msra.gmra.mxu1 %v4901_v47  ;;  %3184 = vmatmul.mubr.bf16.vlgmr.msra.gmra.mxu0 %v4903_v48  ;;  %v1663_v33 = vld [vmem:[#allocation7 + $0x428] sm:$0xff] }
 0x8b9   : > { %3195 = vmatpush1.bf16.msra.mxu1 %v3914_v60  ;;  %3238 = vmatpush1.bf16.msra.mxu0 %v4042_v61  ;;  %v1559_v60 = vld [vmem:[#allocation7 + $0xe8] sm:$0xff]  ;;  %v3987_v41 = vcombine.high %v1659_v29, %v1663_v33  ;;  %v3986_v49 = vcombine.low %v1659_v29, %v1663_v33 }
 0x8ba   : > { %3226 = vmatprep.mubr.bf16.mxu1 %v4897_v45  ;;  %3269 = vmatprep.mubr.bf16.mxu0 %v4899_v46  ;;  %v1683_v61 = vld [vmem:[#allocation7 + $0x4c8] sm:$0xff]  ;;  %v3883_v30 = vcombine.high %v1555_v35, %v1559_v60  ;;  %v3882_v6 = vcombine.low %v1555_v35, %v1559_v60 }
 0x8bb   : > { %3196 = vmatprep.subr.bf16.mxu1 %v3907_v50  ;;  %3239 = vmatprep.subr.bf16.mxu0 %v4035_v51  ;;  %v4011_v3 = vcombine.high %v1683_v61, %v1687_v62  ;;  %v4010_v7 = vcombine.low %v1683_v61, %v1687_v62  ;;  %v1651_v37 = vld [vmem:[#allocation7 + $0x3c8] sm:$0xff]  ;;  %v4107_v51 = vcombine.high %v1779_v42, %v1783_v43 }
 0x8bc   : > { %v1655_v0 = vld [vmem:[#allocation7 + $0x3e8] sm:$0xff] }
 0x8bd   : > { %3197 = vmatpush1.bf16.msra.mxu1 %v3906_v53  ;;  %3240 = vmatpush1.bf16.msra.mxu0 %v4034_v54  ;;  %v3979_v50 = vcombine.high %v1651_v37, %v1655_v0  ;;  %v1775_v53 = vld [vmem:[#allocation7 + $0x7a8] sm:$0xff]  ;;  %v3978_v54 = vcombine.low %v1651_v37, %v1655_v0 }
 0x8be   : > { %3198 = vmatprep.subr.bf16.mxu1 %v3899_v55  ;;  %3241 = vmatprep.subr.bf16.mxu0 %v4027_v56  ;;  %v4106_v55 = vcombine.low %v1779_v42, %v1783_v43  ;;  %v3971_v56 = vcombine.high %v1643_v9, %v1647_v13  ;;  %v4099_v57 = vcombine.high %v1771_v52, %v1775_v53  ;;  %v1627_v60 = vld [vmem:[#allocation7 + $0x308] sm:$0xff] }
 0x8bf   : > { %v1631_v61 = vld [vmem:[#allocation7 + $0x328] sm:$0xff] }
 0x8c0   : > { %v1755_v62 = vld [vmem:[#allocation7 + $0x708] sm:$0xff] }
 0x8c1   : > { %3199 = vmatpush1.bf16.msra.mxu1 %v3898_v14  ;;  %3242 = vmatpush1.bf16.msra.mxu0 %v4026_v58  ;;  %v1767_v14 = vld [vmem:[#allocation7 + $0x768] sm:$0xff]  ;;  %v3970_v58 = vcombine.low %v1643_v9, %v1647_v13  ;;  %v1588_v13 = vld [vmem:[#allocation7 + $0x1d0] sm:$0xff] }
 0x8c2   : > { %3200 = vmatprep.subr.bf16.mxu1 %v3891_v59  ;;  %3243 = vmatprep.subr.bf16.mxu0 %v4019_v32  ;;  %v4098_v59 = vcombine.low %v1771_v52, %v1775_v53  ;;  %v3963_v32 = vcombine.high %v1635_v11, %v1639_v34  ;;  %v4091_v35 = vcombine.high %v1763_v36, %v1767_v14  ;;  %v1619_v27 = vld [vmem:[#allocation7 + $0x2c8] sm:$0xff]  ;;  %v1592_v52 = vld [vmem:[#allocation7 + $0x1f0] sm:$0xff] }
 0x8c3   : > { %v1623_v31 = vld [vmem:[#allocation7 + $0x2e8] sm:$0xff]  ;;  %v1716_v53 = vld [vmem:[#allocation7 + $0x5d0] sm:$0xff] }
 0x8c4   : > { %v1747_v5 = vld [vmem:[#allocation7 + $0x6c8] sm:$0xff] }
 0x8c5   : > { %3201 = vmatpush1.bf16.msra.mxu1 %v3890_v2  ;;  %3244 = vmatpush1.bf16.msra.mxu0 %v4018_v25  ;;  %v1759_v2 = vld [vmem:[#allocation7 + $0x728] sm:$0xff]  ;;  %v3962_v25 = vcombine.low %v1635_v11, %v1639_v34  ;;  %v1580_v34 = vld [vmem:[#allocation7 + $0x190] sm:$0xff] }
 0x8c6   : > { %3202 = vmatprep.subr.bf16.mxu1 %v3883_v30  ;;  %3245 = vmatprep.subr.bf16.mxu0 %v4011_v3  ;;  %v4090_v30 = vcombine.low %v1763_v36, %v1767_v14  ;;  %v3955_v3 = vcombine.high %v1627_v60, %v1631_v61  ;;  %v4083_v4 = vcombine.high %v1755_v62, %v1759_v2  ;;  %v1611_v16 = vld [vmem:[#allocation7 + $0x288] sm:$0xff]  ;;  %v1584_v36 = vld [vmem:[#allocation7 + $0x1b0] sm:$0xff] }
 0x8c7   : > { %v1615_v17 = vld [vmem:[#allocation7 + $0x2a8] sm:$0xff]  ;;  %v1708_v14 = vld [vmem:[#allocation7 + $0x590] sm:$0xff] }
 0x8c8   : > { %v1739_v18 = vld [vmem:[#allocation7 + $0x688] sm:$0xff] }
 0x8c9   : > { %3203 = vmatpush1.bf16.msra.mxu1 %v3882_v6  ;;  %3246 = vmatpush1.bf16.msra.mxu0 %v4010_v7  ;;  %v1751_v6 = vld [vmem:[#allocation7 + $0x6e8] sm:$0xff]  ;;  %v3954_v7 = vcombine.low %v1627_v60, %v1631_v61  ;;  %v1572_v61 = vld [vmem:[#allocation7 + $0x150] sm:$0xff] }
 0x8ca   : > { %3204 = vmatprep.subr.bf16.mxu1 %v3875_v8  ;;  %3247 = vmatprep.subr.bf16.mxu0 %v4003_v10  ;;  %v4082_v8 = vcombine.low %v1755_v62, %v1759_v2  ;;  %v3947_v10 = vcombine.high %v1619_v27, %v1623_v31  ;;  %v4075_v12 = vcombine.high %v1747_v5, %v1751_v6  ;;  %v1603_v28 = vld [vmem:[#allocation7 + $0x248] sm:$0xff]  ;;  %v1576_v62 = vld [vmem:[#allocation7 + $0x170] sm:$0xff] }
 0x8cb   : > { %v1607_v29 = vld [vmem:[#allocation7 + $0x268] sm:$0xff]  ;;  %v1700_v2 = vld [vmem:[#allocation7 + $0x550] sm:$0xff] }
 0x8cc   : > { %v1731_v33 = vld [vmem:[#allocation7 + $0x648] sm:$0xff] }
 0x8cd   : > { %3205 = vmatpush1.bf16.msra.mxu1 %v3874_v15  ;;  %3248 = vmatpush1.bf16.msra.mxu0 %v4002_v21  ;;  %v1743_v15 = vld [vmem:[#allocation7 + $0x6a8] sm:$0xff]  ;;  %v3946_v21 = vcombine.low %v1619_v27, %v1623_v31  ;;  %v1564_v31 = vld [vmem:[#allocation7 + $0x110] sm:$0xff] }
 0x8ce   : > { %3206 = vmatprep.subr.bf16.mxu1 %v3867_v22  ;;  %3249 = vmatprep.subr.bf16.mxu0 %v3995_v24  ;;  %v4074_v22 = vcombine.low %v1747_v5, %v1751_v6  ;;  %v3939_v24 = vcombine.high %v1611_v16, %v1615_v17  ;;  %v4067_v26 = vcombine.high %v1739_v18, %v1743_v15  ;;  %v1595_v0 = vld [vmem:[#allocation7 + $0x208] sm:$0xff]  ;;  %v1568_v5 = vld [vmem:[#allocation7 + $0x130] sm:$0xff] }
 0x8cf   : > { %v1599_v42 = vld [vmem:[#allocation7 + $0x228] sm:$0xff]  ;;  %v1692_v6 = vld [vmem:[#allocation7 + $0x510] sm:$0xff] }
 0x8d0   : > { %v1723_v43 = vld [vmem:[#allocation7 + $0x608] sm:$0xff] }
 0x8d1   : > { %3207 = vmatpush1.bf16.msra.mxu1 %v3866_v38  ;;  %3250 = vmatpush1.bf16.msra.mxu0 %v3994_v39  ;;  %v1735_v38 = vld [vmem:[#allocation7 + $0x668] sm:$0xff]  ;;  %v3938_v39 = vcombine.low %v1611_v16, %v1615_v17  ;;  %v1556_v17 = vld [vmem:[#allocation7 + $0xd0] sm:$0xff] }
 0x8d2   : > { %3208 = vmatprep.subr.bf16.mxu1 %v3859_v40  ;;  %3251 = vmatprep.subr.bf16.mxu0 %v3987_v41  ;;  %v4066_v40 = vcombine.low %v1739_v18, %v1743_v15  ;;  %v3931_v41 = vcombine.high %v1603_v28, %v1607_v29  ;;  %v4059_v37 = vcombine.high %v1731_v33, %v1735_v38  ;;  %v1560_v18 = vld [vmem:[#allocation7 + $0xf0] sm:$0xff] }
 0x8d3   : > { %v1684_v15 = vld [vmem:[#allocation7 + $0x4d0] sm:$0xff] }
 0x8d5   : > { %3209 = vmatpush1.bf16.msra.mxu1 %v3858_v44  ;;  %3252 = vmatpush1.bf16.msra.mxu0 %v3986_v49  ;;  %v1727_v44 = vld [vmem:[#allocation7 + $0x628] sm:$0xff]  ;;  %v3930_v49 = vcombine.low %v1603_v28, %v1607_v29  ;;  %v1548_v29 = vld [vmem:[#allocation7 + $0x90] sm:$0xff] }
 0x8d6   : > { %3210 = vmatprep.subr.bf16.mxu1 %v3979_v50  ;;  %3253 = vmatprep.subr.bf16.mxu0 %v4107_v51  ;;  %v4058_v50 = vcombine.low %v1731_v33, %v1735_v38  ;;  %v3923_v51 = vcombine.high %v1595_v0, %v1599_v42  ;;  %v4051_v9 = vcombine.high %v1723_v43, %v1727_v44  ;;  %v1552_v33 = vld [vmem:[#allocation7 + $0xb0] sm:$0xff] }
 0x8d7   : > { %v1676_v38 = vld [vmem:[#allocation7 + $0x490] sm:$0xff] }
 0x8d9   : > { %3211 = vmatpush2.bf16.msra.mxu1 %v3978_v54  ;;  %3254 = vmatpush2.bf16.msra.mxu0 %v4106_v55  ;;  %v1720_v54 = vld [vmem:[#allocation7 + $0x5f0] sm:$0xff]  ;;  %v3922_v55 = vcombine.low %v1595_v0, %v1599_v42 }
 0x8da   : > { %3212 = vmatprep.subr.bf16.mxu1 %v3971_v56  ;;  %3255 = vmatprep.subr.bf16.mxu0 %v4099_v57  ;;  %v4050_v56 = vcombine.low %v1723_v43, %v1727_v44  ;;  %v3917_v57 = vcombine.high %v1588_v13, %v1592_v52  ;;  %v4045_v11 = vcombine.high %v1716_v53, %v1720_v54  ;;  %v1540_v42 = vld [vmem:[#allocation7 + $0x50] sm:$0xff] }
 0x8db   : > { %v1544_v43 = vld [vmem:[#allocation7 + $0x70] sm:$0xff] }
 0x8dc   : > { %v1668_v44 = vld [vmem:[#allocation7 + $0x450] sm:$0xff] }
 0x8dd   : > { %3213 = vmatpush2.bf16.msra.mxu1 %v3970_v58  ;;  %3256 = vmatpush2.bf16.msra.mxu0 %v4098_v59  ;;  %v1712_v58 = vld [vmem:[#allocation7 + $0x5b0] sm:$0xff]  ;;  %v3916_v59 = vcombine.low %v1588_v13, %v1592_v52 }
 0x8de   : > { %3214 = vmatprep.subr.bf16.mxu1 %v3963_v32  ;;  %3257 = vmatprep.subr.bf16.mxu0 %v4091_v35  ;;  %v4044_v32 = vcombine.low %v1716_v53, %v1720_v54  ;;  %v3909_v35 = vcombine.high %v1580_v34, %v1584_v36  ;;  %v4037_v60 = vcombine.high %v1708_v14, %v1712_v58  ;;  %v1532_v52 = vld [vmem:[#allocation7 + $0x10] sm:$0xff] }
 0x8df   : > { %v1536_v53 = vld [vmem:[#allocation7 + $0x30] sm:$0xff] }
 0x8e0   : > { %v1660_v54 = vld [vmem:[#allocation7 + $0x410] sm:$0xff] }
 0x8e1   : > { %3215 = vmatpush2.bf16.msra.mxu1 %v3962_v25  ;;  %3258 = vmatpush2.bf16.msra.mxu0 %v4090_v30  ;;  %v1704_v25 = vld [vmem:[#allocation7 + $0x570] sm:$0xff]  ;;  %v3908_v30 = vcombine.low %v1580_v34, %v1584_v36 }
 0x8e2   : > { %3216 = vmatprep.subr.bf16.mxu1 %v3955_v3  ;;  %3259 = vmatprep.subr.bf16.mxu0 %v4083_v4  ;;  %v4036_v3 = vcombine.low %v1708_v14, %v1712_v58  ;;  %v3901_v4 = vcombine.high %v1572_v61, %v1576_v62  ;;  %v4029_v27 = vcombine.high %v1700_v2, %v1704_v25  ;;  %v1652_v36 = vld [vmem:[#allocation7 + $0x3d0] sm:$0xff] }
 0x8e3   : > { %v1656_v14 = vld [vmem:[#allocation7 + $0x3f0] sm:$0xff] }
 0x8e4   : > { %v1780_v58 = vld [vmem:[#allocation7 + $0x7d0] sm:$0xff] }
 0x8e5   : > { %3217 = vmatpush2.bf16.msra.mxu1 %v3954_v7  ;;  %3260 = vmatpush2.bf16.msra.mxu0 %v4082_v8  ;;  %v1696_v7 = vld [vmem:[#allocation7 + $0x530] sm:$0xff]  ;;  %v3900_v8 = vcombine.low %v1572_v61, %v1576_v62 }
 0x8e6   : > { %3218 = vmatprep.subr.bf16.mxu1 %v3947_v10  ;;  %3261 = vmatprep.subr.bf16.mxu0 %v4075_v12  ;;  %v4028_v10 = vcombine.low %v1700_v2, %v1704_v25  ;;  %v3893_v12 = vcombine.high %v1564_v31, %v1568_v5  ;;  %v4021_v16 = vcombine.high %v1692_v6, %v1696_v7  ;;  %v1644_v62 = vld [vmem:[#allocation7 + $0x390] sm:$0xff] }
 0x8e7   : > { %v1648_v2 = vld [vmem:[#allocation7 + $0x3b0] sm:$0xff] }
 0x8e8   : > { %v1772_v25 = vld [vmem:[#allocation7 + $0x790] sm:$0xff] }
 0x8e9   : > { %3219 = vmatpush2.bf16.msra.mxu1 %v3946_v21  ;;  %3262 = vmatpush2.bf16.msra.mxu0 %v4074_v22  ;;  %v1688_v21 = vld [vmem:[#allocation7 + $0x4f0] sm:$0xff]  ;;  %v3892_v22 = vcombine.low %v1564_v31, %v1568_v5 }
 0x8ea   : > { %3220 = vmatprep.subr.bf16.mxu1 %v3939_v24  ;;  %3263 = vmatprep.subr.bf16.mxu0 %v4067_v26  ;;  %v4020_v24 = vcombine.low %v1692_v6, %v1696_v7  ;;  %v3885_v26 = vcombine.high %v1556_v17, %v1560_v18  ;;  %v4013_v28 = vcombine.high %v1684_v15, %v1688_v21  ;;  %v1636_v5 = vld [vmem:[#allocation7 + $0x350] sm:$0xff] }
 0x8eb   : > { %v1640_v6 = vld [vmem:[#allocation7 + $0x370] sm:$0xff] }
 0x8ec   : > { %v1764_v7 = vld [vmem:[#allocation7 + $0x750] sm:$0xff] }
 0x8ed   : > { %3221 = vmatpush2.bf16.msra.mxu1 %v3938_v39  ;;  %3264 = vmatpush2.bf16.msra.mxu0 %v4066_v40  ;;  %v1680_v39 = vld [vmem:[#allocation7 + $0x4b0] sm:$0xff]  ;;  %v3884_v40 = vcombine.low %v1556_v17, %v1560_v18 }
 0x8ee   : > { %3222 = vmatprep.subr.bf16.mxu1 %v3931_v41  ;;  %3265 = vmatprep.subr.bf16.mxu0 %v4059_v37  ;;  %v4012_v41 = vcombine.low %v1684_v15, %v1688_v21  ;;  %v3877_v37 = vcombine.high %v1548_v29, %v1552_v33  ;;  %v4005_v0 = vcombine.high %v1676_v38, %v1680_v39  ;;  %v1628_v18 = vld [vmem:[#allocation7 + $0x310] sm:$0xff] }
 0x8ef   : > { %v1632_v15 = vld [vmem:[#allocation7 + $0x330] sm:$0xff] }
 0x8f0   : > { %v1756_v21 = vld [vmem:[#allocation7 + $0x710] sm:$0xff] }
 0x8f1   : > { %3223 = vmatpush2.bf16.msra.mxu1 %v3930_v49  ;;  %3266 = vmatpush2.bf16.msra.mxu0 %v4058_v50  ;;  %v1672_v49 = vld [vmem:[#allocation7 + $0x470] sm:$0xff]  ;;  %v3876_v50 = vcombine.low %v1548_v29, %v1552_v33 }
 0x8f2   : > { %3224 = vmatprep.subr.bf16.mxu1 %v3923_v51  ;;  %3267 = vmatprep.subr.bf16.mxu0 %v4051_v9  ;;  %v4004_v51 = vcombine.low %v1676_v38, %v1680_v39  ;;  %v3869_v9 = vcombine.high %v1540_v42, %v1544_v43  ;;  %v3997_v13 = vcombine.high %v1668_v44, %v1672_v49  ;;  %v1620_v33 = vld [vmem:[#allocation7 + $0x2d0] sm:$0xff] }
 0x8f3   : > { %v1624_v38 = vld [vmem:[#allocation7 + $0x2f0] sm:$0xff] }
 0x8f4   : > { %v1748_v39 = vld [vmem:[#allocation7 + $0x6d0] sm:$0xff] }
 0x8f5   : > { %3225 = vmatpush2.bf16.msra.mxu1 %v3922_v55  ;;  %3268 = vmatpush2.bf16.msra.mxu0 %v4050_v56  ;;  %v1664_v55 = vld [vmem:[#allocation7 + $0x430] sm:$0xff]  ;;  %v3868_v56 = vcombine.low %v1540_v42, %v1544_v43 }
 0x8f6   : > { %3280 = vmatprep.subr.bf16.mxu1 %v3917_v57  ;;  %3323 = vmatprep.subr.bf16.mxu0 %v4045_v11  ;;  %v3996_v57 = vcombine.low %v1668_v44, %v1672_v49  ;;  %v3861_v11 = vcombine.high %v1532_v52, %v1536_v53  ;;  %v3989_v34 = vcombine.high %v1660_v54, %v1664_v55  ;;  %v1612_v43 = vld [vmem:[#allocation7 + $0x290] sm:$0xff] }
 0x8f7   : > { %v1616_v44 = vld [vmem:[#allocation7 + $0x2b0] sm:$0xff] }
 0x8f8   : > { %3227 = vmatmul.mubr.bf16.vlgmr.msra.gmra.mxu1 %v4901_v47  ;;  %3270 = vmatmul.mubr.bf16.vlgmr.msra.gmra.mxu0 %v4903_v48  ;;  %v1740_v49 = vld [vmem:[#allocation7 + $0x690] sm:$0xff] }
 0x8f9   : > { %3281 = vmatpush1.bf16.msra.mxu1 %v3916_v59  ;;  %3312 = vmatprep.mubr.bf16.mxu1 %v4897_v45  ;;  %v1784_v59 = vld [vmem:[#allocation7 + $0x7f0] sm:$0xff] }
 0x8fa   : > { %3324 = vmatpush1.bf16.msra.mxu0 %v4044_v32  ;;  %3355 = vmatprep.mubr.bf16.mxu0 %v4899_v46  ;;  %v3860_v32 = vcombine.low %v1532_v52, %v1536_v53  ;;  %v4109_v61 = vcombine.high %v1780_v58, %v1784_v59  ;;  %v1604_v53 = vld [vmem:[#allocation7 + $0x250] sm:$0xff] }
 0x8fb   : > { %3282 = vmatprep.subr.bf16.mxu1 %v3909_v35  ;;  %3325 = vmatprep.subr.bf16.mxu0 %v4037_v60  ;;  %v3988_v35 = vcombine.low %v1660_v54, %v1664_v55  ;;  %v3981_v60 = vcombine.high %v1652_v36, %v1656_v14  ;;  %v1608_v54 = vld [vmem:[#allocation7 + $0x270] sm:$0xff] }
 0x8fc   : > { %v1732_v55 = vld [vmem:[#allocation7 + $0x650] sm:$0xff] }
 0x8fd   : > { %3283 = vmatpush1.bf16.msra.mxu1 %v3908_v30  ;;  %v1776_v30 = vld [vmem:[#allocation7 + $0x7b0] sm:$0xff] }
 0x8fe   : > { %3326 = vmatpush1.bf16.msra.mxu0 %v4036_v3  ;;  %3284 = vmatprep.subr.bf16.mxu1 %v3901_v4  ;;  %v3980_v3 = vcombine.low %v1652_v36, %v1656_v14  ;;  %v4108_v4 = vcombine.low %v1780_v58, %v1784_v59  ;;  %v4101_v31 = vcombine.high %v1772_v25, %v1776_v30  ;;  %v1596_v14 = vld [vmem:[#allocation7 + $0x210] sm:$0xff] }
 0x8ff   : > { %3327 = vmatprep.subr.bf16.mxu0 %v4029_v27  ;;  %v3973_v27 = vcombine.high %v1644_v62, %v1648_v2  ;;  %v1600_v58 = vld [vmem:[#allocation7 + $0x230] sm:$0xff] }
 0x900   : > { %v1724_v59 = vld [vmem:[#allocation7 + $0x610] sm:$0xff] }
 0x901   : > { %3285 = vmatpush1.bf16.msra.mxu1 %v3900_v8  ;;  %v1768_v8 = vld [vmem:[#allocation7 + $0x770] sm:$0xff] }
 0x902   : > { %3328 = vmatpush1.bf16.msra.mxu0 %v4028_v10  ;;  %3286 = vmatprep.subr.bf16.mxu1 %v3893_v12  ;;  %v3972_v10 = vcombine.low %v1644_v62, %v1648_v2  ;;  %v4100_v12 = vcombine.low %v1772_v25, %v1776_v30  ;;  %v4093_v17 = vcombine.high %v1764_v7, %v1768_v8  ;;  %v1589_v2 = vld [vmem:[#allocation7 + $0x1d8] sm:$0xff] }
 0x903   : > { %3329 = vmatprep.subr.bf16.mxu0 %v4021_v16  ;;  %v3965_v16 = vcombine.high %v1636_v5, %v1640_v6  ;;  %v1593_v25 = vld [vmem:[#allocation7 + $0x1f8] sm:$0xff] }
 0x904   : > { %v1717_v30 = vld [vmem:[#allocation7 + $0x5d8] sm:$0xff] }
 0x905   : > { %3287 = vmatpush1.bf16.msra.mxu1 %v3892_v22  ;;  %v1760_v22 = vld [vmem:[#allocation7 + $0x730] sm:$0xff] }
 0x906   : > { %3330 = vmatpush1.bf16.msra.mxu0 %v4020_v24  ;;  %3288 = vmatprep.subr.bf16.mxu1 %v3885_v26  ;;  %v3964_v24 = vcombine.low %v1636_v5, %v1640_v6  ;;  %v4092_v26 = vcombine.low %v1764_v7, %v1768_v8  ;;  %v4085_v29 = vcombine.high %v1756_v21, %v1760_v22  ;;  %v1581_v6 = vld [vmem:[#allocation7 + $0x198] sm:$0xff] }
 0x907   : > { %3331 = vmatprep.subr.bf16.mxu0 %v4013_v28  ;;  %v3957_v28 = vcombine.high %v1628_v18, %v1632_v15  ;;  %v1585_v7 = vld [vmem:[#allocation7 + $0x1b8] sm:$0xff]  ;;  %v3918_v8 = vcombine.low %v1589_v2, %v1593_v25 }
 0x909   : > { %3289 = vmatpush1.bf16.msra.mxu1 %v3884_v40  ;;  %v1752_v40 = vld [vmem:[#allocation7 + $0x6f0] sm:$0xff] }
 0x90a   : > { %3332 = vmatpush1.bf16.msra.mxu0 %v4012_v41  ;;  %3290 = vmatprep.subr.bf16.mxu1 %v3877_v37  ;;  %v3956_v41 = vcombine.low %v1628_v18, %v1632_v15  ;;  %v4084_v37 = vcombine.low %v1756_v21, %v1760_v22  ;;  %v4077_v42 = vcombine.high %v1748_v39, %v1752_v40  ;;  %v1573_v18 = vld [vmem:[#allocation7 + $0x158] sm:$0xff] }
 0x90b   : > { %3333 = vmatprep.subr.bf16.mxu0 %v4005_v0  ;;  %v3949_v0 = vcombine.high %v1620_v33, %v1624_v38  ;;  %v1577_v15 = vld [vmem:[#allocation7 + $0x178] sm:$0xff] }
 0x90c   : > { %v1701_v22 = vld [vmem:[#allocation7 + $0x558] sm:$0xff] }
 0x90d   : > { %3291 = vmatpush1.bf16.msra.mxu1 %v3876_v50  ;;  %v1744_v50 = vld [vmem:[#allocation7 + $0x6b0] sm:$0xff] }
 0x90e   : > { %3334 = vmatpush1.bf16.msra.mxu0 %v4004_v51  ;;  %3292 = vmatprep.subr.bf16.mxu1 %v3869_v9  ;;  %v3948_v51 = vcombine.low %v1620_v33, %v1624_v38  ;;  %v4076_v9 = vcombine.low %v1748_v39, %v1752_v40  ;;  %v4069_v52 = vcombine.high %v1740_v49, %v1744_v50  ;;  %v1565_v38 = vld [vmem:[#allocation7 + $0x118] sm:$0xff] }
 0x90f   : > { %3335 = vmatprep.subr.bf16.mxu0 %v3997_v13  ;;  %v3941_v13 = vcombine.high %v1612_v43, %v1616_v44  ;;  %v1569_v39 = vld [vmem:[#allocation7 + $0x138] sm:$0xff] }
 0x910   : > { %v1693_v40 = vld [vmem:[#allocation7 + $0x518] sm:$0xff] }
 0x911   : > { %3293 = vmatpush1.bf16.msra.mxu1 %v3868_v56  ;;  %v1736_v56 = vld [vmem:[#allocation7 + $0x670] sm:$0xff] }
 0x912   : > { %3336 = vmatpush1.bf16.msra.mxu0 %v3996_v57  ;;  %3294 = vmatprep.subr.bf16.mxu1 %v3861_v11  ;;  %v3940_v57 = vcombine.low %v1612_v43, %v1616_v44  ;;  %v4068_v11 = vcombine.low %v1740_v49, %v1744_v50  ;;  %v4061_v36 = vcombine.high %v1732_v55, %v1736_v56  ;;  %v1557_v43 = vld [vmem:[#allocation7 + $0xd8] sm:$0xff] }
 0x913   : > { %3337 = vmatprep.subr.bf16.mxu0 %v3989_v34  ;;  %v3933_v34 = vcombine.high %v1604_v53, %v1608_v54  ;;  %v1561_v44 = vld [vmem:[#allocation7 + $0xf8] sm:$0xff] }
 0x914   : > { %v1685_v49 = vld [vmem:[#allocation7 + $0x4d8] sm:$0xff] }
 0x915   : > { %3295 = vmatpush1.bf16.msra.mxu1 %v3860_v32  ;;  %v1728_v32 = vld [vmem:[#allocation7 + $0x630] sm:$0xff]  ;;  %v1689_v50 = vld [vmem:[#allocation7 + $0x4f8] sm:$0xff] }
 0x916   : > { %3338 = vmatpush1.bf16.msra.mxu0 %v3988_v35  ;;  %3296 = vmatprep.subr.bf16.mxu1 %v3981_v60  ;;  %v3932_v35 = vcombine.low %v1604_v53, %v1608_v54  ;;  %v4060_v60 = vcombine.low %v1732_v55, %v1736_v56  ;;  %v4053_v62 = vcombine.high %v1724_v59, %v1728_v32  ;;  %v1553_v53 = vld [vmem:[#allocation7 + $0xb8] sm:$0xff] }
 0x917   : > { %3339 = vmatprep.subr.bf16.mxu0 %v4109_v61  ;;  %v3925_v61 = vcombine.high %v1596_v14, %v1600_v58  ;;  %v1677_v54 = vld [vmem:[#allocation7 + $0x498] sm:$0xff]  ;;  %v3886_v56 = vcombine.low %v1557_v43, %v1561_v44 }
 0x918   : > { %v1681_v55 = vld [vmem:[#allocation7 + $0x4b8] sm:$0xff] }
 0x919   : > { %3297 = vmatpush2.bf16.msra.mxu1 %v3980_v3  ;;  %v1721_v3 = vld [vmem:[#allocation7 + $0x5f8] sm:$0xff] }
 0x91a   : > { %3340 = vmatpush2.bf16.msra.mxu0 %v4108_v4  ;;  %3298 = vmatprep.subr.bf16.mxu1 %v3973_v27  ;;  %v3924_v4 = vcombine.low %v1596_v14, %v1600_v58  ;;  %v4052_v27 = vcombine.low %v1724_v59, %v1728_v32  ;;  %v4047_v5 = vcombine.high %v1717_v30, %v1721_v3  ;;  %v1545_v14 = vld [vmem:[#allocation7 + $0x78] sm:$0xff] }
 0x91b   : > { %3341 = vmatprep.subr.bf16.mxu0 %v4101_v31  ;;  %v3919_v31 = vcombine.high %v1589_v2, %v1593_v25  ;;  %v1669_v58 = vld [vmem:[#allocation7 + $0x458] sm:$0xff] }
 0x91c   : > { %v1673_v59 = vld [vmem:[#allocation7 + $0x478] sm:$0xff] }
 0x91d   : > { %3299 = vmatpush2.bf16.msra.mxu1 %v3972_v10  ;;  %v1709_v10 = vld [vmem:[#allocation7 + $0x598] sm:$0xff] }
 0x91e   : > { %3342 = vmatpush2.bf16.msra.mxu0 %v4100_v12  ;;  %3300 = vmatprep.subr.bf16.mxu1 %v3965_v16  ;;  %v1713_v12 = vld [vmem:[#allocation7 + $0x5b8] sm:$0xff]  ;;  %v4046_v16 = vcombine.low %v1717_v30, %v1721_v3 }
 0x91f   : > { %3343 = vmatprep.subr.bf16.mxu0 %v4093_v17  ;;  %v3911_v17 = vcombine.high %v1581_v6, %v1585_v7  ;;  %v4039_v21 = vcombine.high %v1709_v10, %v1713_v12  ;;  %v1537_v2 = vld [vmem:[#allocation7 + $0x38] sm:$0xff] }
 0x920   : > { %v1661_v25 = vld [vmem:[#allocation7 + $0x418] sm:$0xff] }
 0x921   : > { %3301 = vmatpush2.bf16.msra.mxu1 %v3964_v24  ;;  %v1705_v24 = vld [vmem:[#allocation7 + $0x578] sm:$0xff] }
 0x922   : > { %3344 = vmatpush2.bf16.msra.mxu0 %v4092_v26  ;;  %3302 = vmatprep.subr.bf16.mxu1 %v3957_v28  ;;  %v3910_v26 = vcombine.low %v1581_v6, %v1585_v7  ;;  %v4038_v28 = vcombine.low %v1709_v10, %v1713_v12  ;;  %v4031_v33 = vcombine.high %v1701_v22, %v1705_v24  ;;  %v1665_v30 = vld [vmem:[#allocation7 + $0x438] sm:$0xff] }
 0x923   : > { %3345 = vmatprep.subr.bf16.mxu0 %v4085_v29  ;;  %v3903_v29 = vcombine.high %v1573_v18, %v1577_v15  ;;  %v1657_v6 = vld [vmem:[#allocation7 + $0x3f8] sm:$0xff]  ;;  %v3990_v12 = vcombine.low %v1661_v25, %v1665_v30 }
 0x924   : > { %v1781_v7 = vld [vmem:[#allocation7 + $0x7d8] sm:$0xff] }
 0x925   : > { %3303 = vmatpush2.bf16.msra.mxu1 %v3956_v41  ;;  %v1697_v41 = vld [vmem:[#allocation7 + $0x538] sm:$0xff] }
 0x926   : > { %3346 = vmatpush2.bf16.msra.mxu0 %v4084_v37  ;;  %3304 = vmatprep.subr.bf16.mxu1 %v3949_v0  ;;  %v3902_v37 = vcombine.low %v1573_v18, %v1577_v15  ;;  %v4030_v0 = vcombine.low %v1701_v22, %v1705_v24  ;;  %v1645_v18 = vld [vmem:[#allocation7 + $0x398] sm:$0xff] }
 0x927   : > { %3347 = vmatprep.subr.bf16.mxu0 %v4077_v42  ;;  %v3895_v42 = vcombine.high %v1565_v38, %v1569_v39  ;;  %v1649_v15 = vld [vmem:[#allocation7 + $0x3b8] sm:$0xff] }
 0x928   : > { %v1777_v22 = vld [vmem:[#allocation7 + $0x7b8] sm:$0xff] }
 0x929   : > { %3305 = vmatpush2.bf16.msra.mxu1 %v3948_v51  ;;  %v4022_v51 = vcombine.low %v1693_v40, %v1697_v41 }
 0x92a   : > { %3348 = vmatpush2.bf16.msra.mxu0 %v4076_v9  ;;  %3306 = vmatprep.subr.bf16.mxu1 %v3941_v13  ;;  %v3887_v9 = vcombine.high %v1557_v43, %v1561_v44  ;;  %v4015_v13 = vcombine.high %v1685_v49, %v1689_v50  ;;  %v1633_v43 = vld [vmem:[#allocation7 + $0x338] sm:$0xff] }
 0x92b   : > { %3349 = vmatprep.subr.bf16.mxu0 %v4069_v52  ;;  %v1549_v52 = vld [vmem:[#allocation7 + $0x98] sm:$0xff] }
 0x92c   : > { %v3878_v32 = vcombine.low %v1549_v52, %v1553_v53  ;;  %v1757_v44 = vld [vmem:[#allocation7 + $0x718] sm:$0xff] }
 0x92d   : > { %3307 = vmatpush2.bf16.msra.mxu1 %v3940_v57  ;;  %v4014_v57 = vcombine.low %v1685_v49, %v1689_v50  ;;  %v1761_v49 = vld [vmem:[#allocation7 + $0x738] sm:$0xff] }
 0x92e   : > { %3350 = vmatpush2.bf16.msra.mxu0 %v4068_v11  ;;  %3308 = vmatprep.subr.bf16.mxu1 %v3933_v34  ;;  %v3879_v11 = vcombine.high %v1549_v52, %v1553_v53  ;;  %v4007_v34 = vcombine.high %v1677_v54, %v1681_v55  ;;  %v1625_v52 = vld [vmem:[#allocation7 + $0x2f8] sm:$0xff] }
 0x92f   : > { %3351 = vmatprep.subr.bf16.mxu0 %v4061_v36  ;;  %v1541_v36 = vld [vmem:[#allocation7 + $0x58] sm:$0xff] }
 0x930   : > { %v3870_v3 = vcombine.low %v1541_v36, %v1545_v14  ;;  %v1749_v53 = vld [vmem:[#allocation7 + $0x6d8] sm:$0xff] }
 0x931   : > { %3309 = vmatpush2.bf16.msra.mxu1 %v3932_v35  ;;  %v4006_v35 = vcombine.low %v1677_v54, %v1681_v55  ;;  %v1753_v54 = vld [vmem:[#allocation7 + $0x6f8] sm:$0xff] }
 0x932   : > { %3352 = vmatpush2.bf16.msra.mxu0 %v4060_v60  ;;  %3310 = vmatprep.subr.bf16.mxu1 %v3925_v61  ;;  %v3871_v60 = vcombine.high %v1541_v36, %v1545_v14  ;;  %v3999_v61 = vcombine.high %v1669_v58, %v1673_v59  ;;  %v1617_v36 = vld [vmem:[#allocation7 + $0x2b8] sm:$0xff] }
 0x933   : > { %3353 = vmatprep.subr.bf16.mxu0 %v4053_v62  ;;  %v1533_v62 = vld [vmem:[#allocation7 + $0x18] sm:$0xff] }
 0x934   : > { %v3862_v10 = vcombine.low %v1533_v62, %v1537_v2  ;;  %v1741_v14 = vld [vmem:[#allocation7 + $0x698] sm:$0xff] }
 0x935   : > { %3311 = vmatpush2.bf16.msra.mxu1 %v3924_v4  ;;  %v3998_v4 = vcombine.low %v1669_v58, %v1673_v59  ;;  %v1745_v58 = vld [vmem:[#allocation7 + $0x6b8] sm:$0xff] }
 0x936   : > { %3354 = vmatpush2.bf16.msra.mxu0 %v4052_v27  ;;  %3366 = vmatprep.subr.bf16.mxu1 %v3919_v31  ;;  %v3863_v27 = vcombine.high %v1533_v62, %v1537_v2  ;;  %v3991_v31 = vcombine.high %v1661_v25, %v1665_v30  ;;  %v1609_v62 = vld [vmem:[#allocation7 + $0x278] sm:$0xff] }
 0x937   : > { %3409 = vmatprep.subr.bf16.mxu0 %v4047_v5  ;;  %v1653_v5 = vld [vmem:[#allocation7 + $0x3d8] sm:$0xff] }
 0x938   : > { %3313 = vmatmul.mubr.bf16.vlgmr.msra.gmra.mxu1 %v4901_v47  ;;  %v3982_v24 = vcombine.low %v1653_v5, %v1657_v6  ;;  %v1733_v2 = vld [vmem:[#allocation7 + $0x658] sm:$0xff] }
 0x939   : > { %3356 = vmatmul.mubr.bf16.vlgmr.msra.gmra.mxu0 %v4903_v48  ;;  %3367 = vmatpush1.bf16.msra.mxu1 %v3918_v8  ;;  %v1785_v8 = vld [vmem:[#allocation7 + $0x7f8] sm:$0xff] }
 0x93a   : > { %3398 = vmatprep.mubr.bf16.mxu1 %v4897_v45  ;;  %3410 = vmatpush1.bf16.msra.mxu0 %v4046_v16  ;;  %v4023_v45 = vcombine.high %v1693_v40, %v1697_v41  ;;  %v3983_v16 = vcombine.high %v1653_v5, %v1657_v6  ;;  %v1769_v40 = vld [vmem:[#allocation7 + $0x778] sm:$0xff]  ;;  %v3974_v41 = vcombine.low %v1645_v18, %v1649_v15 }
 0x93b   : > { %3441 = vmatprep.mubr.bf16.mxu0 %v4899_v46  ;;  %3368 = vmatprep.subr.bf16.mxu1 %v3911_v17  ;;  %v3894_v46 = vcombine.low %v1565_v38, %v1569_v39  ;;  %v4111_v17 = vcombine.high %v1781_v7, %v1785_v8  ;;  %v1641_v38 = vld [vmem:[#allocation7 + $0x378] sm:$0xff] }
 0x93c   : > { %3411 = vmatprep.subr.bf16.mxu0 %v4039_v21  ;;  %v1773_v21 = vld [vmem:[#allocation7 + $0x798] sm:$0xff] }
 0x93d   : > { %3369 = vmatpush1.bf16.msra.mxu1 %v3910_v26  ;;  %v4110_v26 = vcombine.low %v1781_v7, %v1785_v8  ;;  %v1765_v39 = vld [vmem:[#allocation7 + $0x758] sm:$0xff] }
 0x93e   : > { %3412 = vmatpush1.bf16.msra.mxu0 %v4038_v28  ;;  %3370 = vmatprep.subr.bf16.mxu1 %v3903_v29  ;;  %v3975_v28 = vcombine.high %v1645_v18, %v1649_v15  ;;  %v4103_v29 = vcombine.high %v1773_v21, %v1777_v22  ;;  %v1737_v25 = vld [vmem:[#allocation7 + $0x678] sm:$0xff] }
 0x93f   : > { %3413 = vmatprep.subr.bf16.mxu0 %v4031_v33  ;;  %v1637_v33 = vld [vmem:[#allocation7 + $0x358] sm:$0xff] }
 0x940   : > { %v3966_v50 = vcombine.low %v1637_v33, %v1641_v38  ;;  %v1601_v5 = vld [vmem:[#allocation7 + $0x238] sm:$0xff] }
 0x941   : > { %3371 = vmatpush1.bf16.msra.mxu1 %v3902_v37  ;;  %v4102_v37 = vcombine.low %v1773_v21, %v1777_v22  ;;  %v1725_v6 = vld [vmem:[#allocation7 + $0x618] sm:$0xff] }
 0x942   : > { %3414 = vmatpush1.bf16.msra.mxu0 %v4030_v0  ;;  %3372 = vmatprep.subr.bf16.mxu1 %v3895_v42  ;;  %v3967_v0 = vcombine.high %v1637_v33, %v1641_v38  ;;  %v4095_v42 = vcombine.high %v1765_v39, %v1769_v40  ;;  %v1729_v7 = vld [vmem:[#allocation7 + $0x638] sm:$0xff] }
 0x943   : > { %3415 = vmatprep.subr.bf16.mxu0 %v4023_v45  ;;  %v1629_v45 = vld [vmem:[#allocation7 + $0x318] sm:$0xff]  ;;  %v4054_v18 = vcombine.low %v1725_v6, %v1729_v7 }
 0x944   : > { %v3958_v55 = vcombine.low %v1629_v45, %v1633_v43 }
 0x945   : > { %3373 = vmatpush1.bf16.msra.mxu1 %v3894_v46  ;;  %v4094_v46 = vcombine.low %v1765_v39, %v1769_v40 }
 0x946   : > { %3416 = vmatpush1.bf16.msra.mxu0 %v4022_v51  ;;  %3374 = vmatprep.subr.bf16.mxu1 %v3887_v9  ;;  %v3959_v51 = vcombine.high %v1629_v45, %v1633_v43  ;;  %v4087_v9 = vcombine.high %v1757_v44, %v1761_v49 }
 0x947   : > { %3417 = vmatprep.subr.bf16.mxu0 %v4015_v13  ;;  %v1621_v13 = vld [vmem:[#allocation7 + $0x2d8] sm:$0xff] }
 0x948   : > { %v3950_v59 = vcombine.low %v1621_v13, %v1625_v52 }
 0x949   : > { %3375 = vmatpush1.bf16.msra.mxu1 %v3886_v56  ;;  %v4086_v56 = vcombine.low %v1757_v44, %v1761_v49 }
 0x94a   : > { %3418 = vmatpush1.bf16.msra.mxu0 %v4014_v57  ;;  %3376 = vmatprep.subr.bf16.mxu1 %v3879_v11  ;;  %v3951_v57 = vcombine.high %v1621_v13, %v1625_v52  ;;  %v4079_v11 = vcombine.high %v1749_v53, %v1753_v54 }
 0x94b   : > { %3419 = vmatprep.subr.bf16.mxu0 %v4007_v34  ;;  %v1613_v34 = vld [vmem:[#allocation7 + $0x298] sm:$0xff] }
 0x94c   : > { %v3942_v30 = vcombine.low %v1613_v34, %v1617_v36 }
 0x94d   : > { %3377 = vmatpush1.bf16.msra.mxu1 %v3878_v32  ;;  %v4078_v32 = vcombine.low %v1749_v53, %v1753_v54 }
 0x94e   : > { %3420 = vmatpush1.bf16.msra.mxu0 %v4006_v35  ;;  %3378 = vmatprep.subr.bf16.mxu1 %v3871_v60  ;;  %v3943_v35 = vcombine.high %v1613_v34, %v1617_v36  ;;  %v4071_v60 = vcombine.high %v1741_v14, %v1745_v58 }
 0x94f   : > { %3421 = vmatprep.subr.bf16.mxu0 %v3999_v61  ;;  %v1605_v61 = vld [vmem:[#allocation7 + $0x258] sm:$0xff] }
 0x950   : > { %v3934_v8 = vcombine.low %v1605_v61, %v1609_v62 }
 0x951   : > { %3379 = vmatpush1.bf16.msra.mxu1 %v3870_v3  ;;  %v4070_v3 = vcombine.low %v1741_v14, %v1745_v58 }
 0x952   : > { %3422 = vmatpush1.bf16.msra.mxu0 %v3998_v4  ;;  %3380 = vmatprep.subr.bf16.mxu1 %v3863_v27  ;;  %v3935_v4 = vcombine.high %v1605_v61, %v1609_v62  ;;  %v4063_v27 = vcombine.high %v1733_v2, %v1737_v25 }
 0x953   : > { %3423 = vmatprep.subr.bf16.mxu0 %v3991_v31  ;;  %v1597_v31 = vld [vmem:[#allocation7 + $0x218] sm:$0xff] }
 0x955   : > { %3381 = vmatpush1.bf16.msra.mxu1 %v3862_v10  ;;  %v4062_v10 = vcombine.low %v1733_v2, %v1737_v25 }
 0x956   : > { %3424 = vmatpush1.bf16.msra.mxu0 %v3990_v12  ;;  %3382 = vmatprep.subr.bf16.mxu1 %v3983_v16  ;;  %v3927_v12 = vcombine.high %v1597_v31, %v1601_v5  ;;  %v4055_v16 = vcombine.high %v1725_v6, %v1729_v7 }
 0x957   : > { %3425 = vmatprep.subr.bf16.mxu0 %v4111_v17  ;;  %v3926_v17 = vcombine.low %v1597_v31, %v1601_v5 }
 0x959   : > { %3383 = vmatpush2.bf16.msra.mxu1 %v3982_v24 }
 0x95a   : > { %3426 = vmatpush2.bf16.msra.mxu0 %v4110_v26  ;;  %3384 = vmatprep.subr.bf16.mxu1 %v3975_v28 }
 0x95b   : > { %3427 = vmatprep.subr.bf16.mxu0 %v4103_v29 }
 0x95d   : > { %3385 = vmatpush2.bf16.msra.mxu1 %v3974_v41 }
 0x95e   : > { %3428 = vmatpush2.bf16.msra.mxu0 %v4102_v37  ;;  %3386 = vmatprep.subr.bf16.mxu1 %v3967_v0 }
 0x95f   : > { %3429 = vmatprep.subr.bf16.mxu0 %v4095_v42 }
 0x961   : > { %3387 = vmatpush2.bf16.msra.mxu1 %v3966_v50 }
 0x962   : > { %3430 = vmatpush2.bf16.msra.mxu0 %v4094_v46  ;;  %3388 = vmatprep.subr.bf16.mxu1 %v3959_v51 }
 0x963   : > { %3431 = vmatprep.subr.bf16.mxu0 %v4087_v9 }
 0x965   : > { %3389 = vmatpush2.bf16.msra.mxu1 %v3958_v55 }
 0x966   : > { %3432 = vmatpush2.bf16.msra.mxu0 %v4086_v56  ;;  %3390 = vmatprep.subr.bf16.mxu1 %v3951_v57 }
 0x967   : > { %3433 = vmatprep.subr.bf16.mxu0 %v4079_v11 }
 0x969   : > { %3391 = vmatpush2.bf16.msra.mxu1 %v3950_v59 }
 0x96a   : > { %3434 = vmatpush2.bf16.msra.mxu0 %v4078_v32  ;;  %3392 = vmatprep.subr.bf16.mxu1 %v3943_v35 }
 0x96b   : > { %3435 = vmatprep.subr.bf16.mxu0 %v4071_v60 }
 0x96d   : > { %3393 = vmatpush2.bf16.msra.mxu1 %v3942_v30 }
 0x96e   : > { %3436 = vmatpush2.bf16.msra.mxu0 %v4070_v3  ;;  %3394 = vmatprep.subr.bf16.mxu1 %v3935_v4 }
 0x96f   : > { %3437 = vmatprep.subr.bf16.mxu0 %v4063_v27 }
 0x971   : > { %3395 = vmatpush2.bf16.msra.mxu1 %v3934_v8 }
 0x972   : > { %3438 = vmatpush2.bf16.msra.mxu0 %v4062_v10  ;;  %3396 = vmatprep.subr.bf16.mxu1 %v3927_v12 }
 0x973   : > { %3439 = vmatprep.subr.bf16.mxu0 %v4055_v16 }
 0x975   : > { %3397 = vmatpush2.bf16.msra.mxu1 %v3926_v17 }
 0x976   : > { %3440 = vmatpush2.bf16.msra.mxu0 %v4054_v18 }
 0x978   : > { %3399 = vmatmul.mubr.bf16.vlgmr.msra.gmra.mxu1 %v4901_v47 }
 0x979   : > { %3442 = vmatmul.mubr.bf16.vlgmr.msra.gmra.mxu0 %v4903_v48 }
 0x97a   : > { %4497 = shalt.err (!%p4494_p11)
}
 0x97b   : > { %s4498_s30 = scalar_lea.hbm %s4928_s18, 768  ;;  %s4502_s27 = scalar_lea.hbm %s5021_s9, 1536 }
 0x97c   : > { %p4499_p0 = scmp.ne.s32.totalorder %s4928_s18, %s4498_s30  ;;  %p4503_p3 = scmp.lt.s32.totalorder %s4928_s18, %s5021_s9 }
 0x97d   : > { %p4504_p2 = scmp.lt.s32.totalorder %s4502_s27, %s4498_s30 }
 0x97e   : > { %p4500_p1 = pnand %p4499_p0, %p4695_p5 }
 0x97f   : > { %p4505_p4 = por %p4504_p2, %p4503_p3 }
 0x980   : > { %p4501_p13 = pneg %p4500_p1 }
 0x982   : > { %p4506_p10 = pnand %p4505_p4, %p4501_p13 }
 0x984   : > { %4509 = shalt.err (!%p4506_p10)
}
 0x985   : > { %s4598_s21 = smov 384   ;;  %s4599_s25 = smov 24   ;;  %v3142_v47 = vpop.f32.mrf.mxu1  ;;  %v3185_v15 = vpop.f32.mrf.mxu0  ;;  %v4956_v44 = vld [vmem:[%s5020_s8] sm:$0xff]  ;;  %v1810_v46 = vsub.s32 5, %v4809_v19  ;;  %v1806_v53 = vsub.s32 4, %v4809_v19 }
 0x986   : > { %4190 = dma.vmem_to_hbm [thread:$0]  (%p4695_p5), %s4922_s29, 768, %s4928_s18, %s3599_s20, %s4598_s21, %s4598_s21, %s4599_s25   ;;  %v1803_v49 = vrot.slane %v4956_v44, %v1106_v63  ;;  %v1795_v51 = vrot.slane %v4956_v44, %v4819_v23  ;;  %v1799_v9 = vrot.slane %v4956_v44, %v1102_v1  ;;  %v1791_v54 = vrot.slane %v4956_v44, %v4812_v20 }
 0x987   : > { %v3144_v48 = vpop.f32.mrf.mxu1  ;;  %v3187_v22 = vpop.f32.mrf.mxu0  ;;  %v1811_v11 = vrot.slane %v4956_v44, %v1810_v46  ;;  %v1807_v1 = vrot.slane %v4956_v44, %v1806_v53  ;;  %s3766_s20 = sshll.u32 %s4850_s22, 3  ;;  %s4119_s28 = sshll.u32 %s4678_s17, 7 }
 0x988   : > { %v3145_v34 = vadd.f32 %v3144_v48, %v1795_v51  ;;  %v3143_v32 = vadd.f32 %v3142_v47, %v1791_v54  ;;  %s407_s30 = scalar_lea.vmem [#allocation9], %s3766_s20  ;;  %s3632_s12 = scalar_lea.hbm %s5022_s10, %s4119_s28 }
 0x989   : > { %v3146_v21 = vpop.f32.mrf.mxu1  ;;  %v3189_v26 = vpop.f32.mrf.mxu0  ;;  %s3634_s26 = sshll.u32 %s407_s30, 4  ;;  %s3604_s15 = scalar_lea.sflag [#allocation10], %s4850_s22  ;;  %s3635_s26 = int_to_ptr.vmem [resolvable:$true] %s3634_s26 }
 0x98a   : > { %v3147_v36 = vadd.f32 %v3146_v21, %v1791_v54  ;;  %v3188_v2 = vadd.f32 %v3187_v22, %v3145_v34  ;;  %v3186_v5 = vadd.f32 %v3185_v15, %v3143_v32  ;;  %s4510_s21 = scalar_lea.vmem %s3635_s26, 128  ;;  %s4601_s25 = smov [#allocation9]  }
 0x98b   : > { %v3148_v24 = vpop.f32.mrf.mxu1  ;;  %v3191_v29 = vpop.f32.mrf.mxu0  ;;  %p4511_p12 = scmp.ne.s32.totalorder %s3635_s26, %s4510_s21  ;;  %s4514_s29 = sshll.u32 %s4601_s25, 4  ;;  %s4515_s29 = int_to_ptr.vmem [resolvable:$false] %s4514_s29 }
 0x98c   : > { %v3149_v55 = vadd.f32 %v3148_v24, %v1795_v51  ;;  %v3190_v25 = vadd.f32 %v3189_v26, %v3147_v36  ;;  %v3453_v16 = vmax.f32 %v3188_v2, 0.0  ;;  %v3452_v24 = vmax.f32 %v3186_v5, 0.0  ;;  %s4516_s17 = scalar_lea.vmem %s4515_s29, 256  ;;  %p4517_p9 = scmp.lt.s32.totalorder %s3635_s26, %s4515_s29 }
 0x98d   : > { %p4512_p7 = pnand %p4511_p12, %p4695_p5  ;;  %p4518_p8 = scmp.lt.s32.totalorder %s4516_s17, %s4510_s21 }
 0x98e   : > { %v3192_v35 = vadd.f32 %v3191_v29, %v3149_v55  ;;  %v3460_v17 = vmax.f32 %v3190_v25, 0.0 }
 0x98f   : > { %p4513_p6 = pneg %p4512_p7  ;;  %p4519_p11 = por %p4518_p8, %p4517_p9 }
 0x990   : > { %v3461_v6 = vmax.f32 %v3192_v35, 0.0 }
 0x991   : > { %p4520_p0 = pnand %p4519_p11, %p4513_p6 }
 0x992   : > { %v3475_v22 = vadd.f32 %v3461_v6, %v3453_v16 }
 0x9b8   : > { %v3228_v28 = vpop.f32.mrf.mxu1  ;;  %v3271_v38 = vpop.f32.mrf.mxu0 }
 0x9b9   : > { %v3229_v23 = vadd.f32 %v3228_v28, %v1799_v9 }
 0x9ba   : > { %v3230_v33 = vpop.f32.mrf.mxu1  ;;  %v3273_v40 = vpop.f32.mrf.mxu0 }
 0x9bb   : > { %v3231_v56 = vadd.f32 %v3230_v33, %v1803_v49  ;;  %v3272_v30 = vadd.f32 %v3271_v38, %v3229_v23  ;;  %v1814_v33 = vsub.s32 6, %v4809_v19  ;;  %v3468_v38 = vadd.f32 %v3460_v17, %v3452_v24 }
 0x9bc   : > { %v3232_v39 = vpop.f32.mrf.mxu1  ;;  %v3275_v37 = vpop.f32.mrf.mxu0 }
 0x9bd   : > { %v3233_v63 = vadd.f32 %v3232_v39, %v1799_v9  ;;  %v3274_v60 = vadd.f32 %v3273_v40, %v3231_v56  ;;  %v3454_v18 = vmax.f32 %v3272_v30, 0.0 }
 0x9be   : > { %v3234_v41 = vpop.f32.mrf.mxu1  ;;  %v3277_v42 = vpop.f32.mrf.mxu0 }
 0x9bf   : > { %v3235_v13 = vadd.f32 %v3234_v41, %v1803_v49  ;;  %v3276_v61 = vadd.f32 %v3275_v37, %v3233_v63  ;;  %v3455_v7 = vmax.f32 %v3274_v60, 0.0  ;;  %v1818_v41 = vsub.s32 7, %v4809_v19 }
 0x9c0   : > { %v3476_v37 = vrot.slane %v3475_v22, 4 }
 0x9c1   : > { %v3278_v14 = vadd.f32 %v3277_v42, %v3235_v13  ;;  %v3462_v8 = vmax.f32 %v3276_v61, 0.0  ;;  %v1819_v46 = vrot.slane %v4956_v44, %v1818_v41 }
 0x9c2   : > { %v3477_v51 = vadd.f32 %v3476_v37, %v3475_v22 }
 0x9c3   : > { %v3463_v3 = vmax.f32 %v3278_v14, 0.0  ;;  %v3482_v26 = vadd.f32 %v3462_v8, %v3454_v18 }
 0x9c4   : > { %v3478_v36 = vrot.slane %v3477_v51, 2 }
 0x9c5   : > { %v3489_v47 = vadd.f32 %v3463_v3, %v3455_v7 }
 0x9c6   : > { %v3479_v25 = vadd.f32 %v3478_v36, %v3477_v51 }
 0x9c7   : > { %v3490_v15 = vrot.slane %v3489_v47, 4 }
 0x9c8   : > { %v3480_v17 = vrot.slane %v3479_v25, 1 }
 0x9c9   : > { %v3491_v49 = vadd.f32 %v3490_v15, %v3489_v47 }
 0x9cb   : > { %v3492_v56 = vrot.slane %v3491_v49, 2 }
 0x9cd   : > { %v3493_v35 = vadd.f32 %v3492_v56, %v3491_v49 }
 0x9cf   : > { %v3494_v7 = vrot.slane %v3493_v35, 1 }
 0x9d1   : > { %v3495_v22 = vadd.f32 %v3494_v7, %v3493_v35 }
 0x9f8   : > { %v3314_v0 = vpop.f32.mrf.mxu1 }
 0x9f9   : > { %v3357_v43 = vpop.f32.mrf.mxu0  ;;  %v3315_v27 = vadd.f32 %v3314_v0, %v1807_v1  ;;  %v3483_v0 = vrot.slane %v3482_v26, 4 }
 0x9fa   : > { %v3316_v45 = vpop.f32.mrf.mxu1 }
 0x9fb   : > { %v3359_v52 = vpop.f32.mrf.mxu0  ;;  %v3317_v62 = vadd.f32 %v3316_v45, %v1811_v11  ;;  %v3358_v48 = vadd.f32 %v3357_v43, %v3315_v27  ;;  %v1815_v45 = vrot.slane %v4956_v44, %v1814_v33  ;;  %v3469_v43 = vrot.slane %v3468_v38, 4 }
 0x9fc   : > { %v3318_v50 = vpop.f32.mrf.mxu1  ;;  %v3484_v9 = vadd.f32 %v3483_v0, %v3482_v26  ;;  %v3481_v33 = vadd.f32 %v3480_v17, %v3479_v25 }
 0x9fd   : > { %v3361_v58 = vpop.f32.mrf.mxu0  ;;  %v3319_v20 = vadd.f32 %v3318_v50, %v1807_v1  ;;  %v3360_v10 = vadd.f32 %v3359_v52, %v3317_v62  ;;  %v3456_v39 = vmax.f32 %v3358_v48, 0.0  ;;  %v3470_v55 = vadd.f32 %v3469_v43, %v3468_v38 }
 0x9fe   : > { %v3320_v57 = vpop.f32.mrf.mxu1  ;;  %v3485_v23 = vrot.slane %v3484_v9, 2  ;;  %v4600_v38 = vmov 1966171168  }
 0x9ff   : > { %v3321_v59 = vadd.f32 %v3320_v57, %v1811_v11  ;;  %v3363_v4 = vpop.f32.mrf.mxu0  ;;  %v3362_v12 = vadd.f32 %v3361_v58, %v3319_v20  ;;  %v3457_v28 = vmax.f32 %v3360_v10, 0.0  ;;  %v3471_v44 = vrot.slane %v3470_v55, 2 }
 0xa00   : > { %v3486_v30 = vadd.f32 %v3485_v23, %v3484_v9  ;;  %v3552_v15 = vunpack.c.l.s4 %v4600_v38 }
 0xa01   : > { %v3364_v31 = vadd.f32 %v3363_v4, %v3321_v59  ;;  %v3464_v29 = vmax.f32 %v3362_v12, 0.0  ;;  %v3472_v6 = vadd.f32 %v3471_v44, %v3470_v55 }
 0xa02   : > { %v3487_v18 = vrot.slane %v3486_v30, 1 }
 0xa03   : > { %v3465_v21 = vmax.f32 %v3364_v31, 0.0  ;;  %v3496_v42 = vadd.f32 %v3464_v29, %v3456_v39  ;;  %v3473_v24 = vrot.slane %v3472_v6, 1 }
 0xa04   : > { %v3488_v39 = vadd.f32 %v3487_v18, %v3486_v30 }
 0xa05   : > { %v3503_v40 = vadd.f32 %v3465_v21, %v3457_v28  ;;  %v3497_v52 = vrot.slane %v3496_v42, 4  ;;  %v3474_v0 = vadd.f32 %v3473_v24, %v3472_v6 }
 0xa06   : > { %v3527_v51 = vmul.f32 0.0625, %v3488_v39 }
 0xa07   : > { %v3504_v50 = vrot.slane %v3503_v40, 4  ;;  %v3498_v58 = vadd.f32 %v3497_v52, %v3496_v42  ;;  %v3528_v42 = vmul.f32 0.0625, %v3495_v22 }
 0xa09   : > { %v3505_v57 = vadd.f32 %v3504_v50, %v3503_v40  ;;  %v3499_v4 = vrot.slane %v3498_v58, 2  ;;  %v3526_v50 = vmul.f32 0.0625, %v3481_v33 }
 0xa0b   : > { %v3506_v61 = vrot.slane %v3505_v57, 2  ;;  %v3500_v47 = vadd.f32 %v3499_v4, %v3498_v58 }
 0xa0d   : > { %v3507_v8 = vadd.f32 %v3506_v61, %v3505_v57  ;;  %v3501_v40 = vrot.slane %v3500_v47, 1 }
 0xa0f   : > { %v3508_v26 = vrot.slane %v3507_v8, 1  ;;  %v3502_v9 = vadd.f32 %v3501_v40, %v3500_v47 }
 0xa38   : > { %v3400_v13 = vpop.f32.mrf.mxu1 }
 0xa39   : > { %v3401_v53 = vadd.f32 %v3400_v13, %v1815_v45  ;;  %v3443_v54 = vpop.f32.mrf.mxu0 }
 0xa3a   : > { %v3402_v63 = vpop.f32.mrf.mxu1 }
 0xa3b   : > { %v3403_v11 = vadd.f32 %v3402_v63, %v1819_v46  ;;  %v3445_v34 = vpop.f32.mrf.mxu0  ;;  %v3444_v1 = vadd.f32 %v3443_v54, %v3401_v53  ;;  %v3525_v53 = vmul.f32 0.0625, %v3474_v0  ;;  %v3548_v54 = vcombine.low %v3527_v51, %v3528_v42 }
 0xa3c   : > { %v3404_v14 = vpop.f32.mrf.mxu1 }
 0xa3d   : > { %v3405_v59 = vadd.f32 %v3404_v14, %v1815_v45  ;;  %v3447_v32 = vpop.f32.mrf.mxu0  ;;  %v3446_v62 = vadd.f32 %v3445_v34, %v3403_v11  ;;  %v3458_v27 = vmax.f32 %v3444_v1, 0.0  ;;  %v3509_v45 = vadd.f32 %v3508_v26, %v3507_v8 }
 0xa3e   : > { %v3406_v60 = vpop.f32.mrf.mxu1  ;;  %v3547_v57 = vcombine.low %v3525_v53, %v3526_v50  ;;  %v3529_v34 = vmul.f32 0.0625, %v3502_v9 }
 0xa3f   : > { %v3448_v20 = vadd.f32 %v3447_v32, %v3405_v59  ;;  %v3407_v2 = vadd.f32 %v3406_v60, %v1819_v46  ;;  %v3449_v3 = vpop.f32.mrf.mxu0  ;;  %v3459_v10 = vmax.f32 %v3446_v62, 0.0  ;;  %v3553_v46 = vunpack.c.0.s8 %v3552_v15 }
 0xa40   : > { %v3530_v55 = vmul.f32 0.0625, %v3509_v45 }
 0xa41   : > { %v3466_v31 = vmax.f32 %v3448_v20, 0.0  ;;  %v3450_v5 = vadd.f32 %v3449_v3, %v3407_v2  ;;  %v3556_v11 = vsub.s32 %v3553_v46, %v4809_v19 }
 0xa42   : > { %v3549_v14 = vcombine.low %v3529_v34, %v3530_v55 }
 0xa43   : > { %v3510_v12 = vadd.f32 %v3466_v31, %v3458_v27  ;;  %v3467_v16 = vmax.f32 %v3450_v5, 0.0  ;;  %v3564_v23 = vrot.slane %v3548_v54, %v3556_v11  ;;  %v3557_v59 = vrot.slane %v3547_v57, %v3556_v11 }
 0xa44   : > { %v3571_v44 = vrot.slane %v3549_v14, %v3556_v11 }
 0xa45   : > { %v3511_v48 = vrot.slane %v3510_v12, 4  ;;  %v3517_v21 = vadd.f32 %v3467_v16, %v3459_v10  ;;  %v3579_v60 = vcombine.low %v3557_v59, %v3564_v23 }
 0xa47   : > { %v3512_v28 = vadd.f32 %v3511_v48, %v3510_v12  ;;  %v3518_v29 = vrot.slane %v3517_v21, 4  ;;  %v3587_v62 = vrot.slane %v3579_v60, %v3556_v11 }
 0xa49   : > { %v3513_v41 = vrot.slane %v3512_v28, 2  ;;  %v3519_v37 = vadd.f32 %v3518_v29, %v3517_v21 }
 0xa4b   : > { %v3514_v43 = vadd.f32 %v3513_v41, %v3512_v28  ;;  %v3520_v49 = vrot.slane %v3519_v37, 2 }
 0xa4d   : > { %v3515_v13 = vrot.slane %v3514_v43, 1  ;;  %v3521_v52 = vadd.f32 %v3520_v49, %v3519_v37 }
 0xa4f   : > { %v3516_v56 = vadd.f32 %v3515_v13, %v3514_v43  ;;  %v3522_v63 = vrot.slane %v3521_v52, 1 }
 0xa51   : > { %v3523_v36 = vadd.f32 %v3522_v63, %v3521_v52  ;;  %v3531_v58 = vmul.f32 0.0625, %v3516_v56 }
 0xa53   : > { %v3532_v1 = vmul.f32 0.0625, %v3523_v36 }
 0xa55   : > { %v3550_v32 = vcombine.low %v3531_v58, %v3532_v1 }
 0xa57   : > { %v3578_v35 = vrot.slane %v3550_v32, %v3556_v11 }
 0xa59   : > { %v3580_v61 = vcombine.low %v3571_v44, %v3578_v35 }
 0xa5b   : > { %v3594_v19 = vrot.slane %v3580_v61, %v3556_v11 }
 0xa5d   : > { %v3595_v20 = vcombine.low %v3587_v62, %v3594_v19 }
 0xa5f   : > { %3597 = vst [vmem:[%s407_s30] sm:$0xff] %v3595_v20 }
 0xa60   : > { %4523 = shalt.err (!%p4520_p0)
}
 0xa61   : > { %s4524_s18 = scalar_lea.hbm %s3632_s12, 128  ;;  %s4528_s28 = scalar_lea.hbm %s5022_s10, 256 }
 0xa62   : > { %p4525_p1 = scmp.ne.s32.totalorder %s3632_s12, %s4524_s18  ;;  %p4529_p2 = scmp.lt.s32.totalorder %s3632_s12, %s5022_s10 }
 0xa63   : > { %p4530_p4 = scmp.lt.s32.totalorder %s4528_s28, %s4524_s18 }
 0xa64   : > { %p4526_p13 = pnand %p4525_p1, %p4695_p5 }
 0xa65   : > { %p4531_p10 = por %p4530_p4, %p4529_p2 }
 0xa66   : > { %p4527_p3 = pneg %p4526_p13 }
 0xa68   : > { %p4532_p12 = pnand %p4531_p10, %p4527_p3 }
 0xa6a   : > { %4535 = shalt.err (!%p4532_p12)
}
 0xa6b   : > { %4191 = dma.vmem_to_hbm [thread:$0]  (%p4695_p5), %s3635_s26, 128, %s3632_s12, %s3604_s15  }
 0xa6c PF: > { %p4217_p7 = scmp.ge.s32.totalorder %s4582_s16, 2  ;;  %s3646_s27 = sand.u32 1, %s4570_s13  }
 0xa6d   : > { %p5035_p6 = scmp.ne.s32.totalorder %s5028_s24, 0  ;;  %s3647_s21 = scalar_lea.sflag [#allocation4], %s3646_s27 }
 0xa6f   : > { %p4205_p9 = pnand %p4217_p7, %p5035_p6 }
 0xa71   : > { %p4206_p8 = pneg %p4205_p9 }
 0xa73   : > { %4561 = dma.done.wait (%p4206_p8), %s3647_s21, 768  }
 0xa74   : > { %4563 = vsyncadd (%p4206_p8), %s3647_s21, 4294966528  ;;  %s3656_s25 = scalar_lea.sflag [#allocation10], %s3646_s27 }
 0xa75   : > { %4565 = dma.done.wait (%p4206_p8), %s3656_s25, 128  }
 0xa76   : > { %4567 = vsyncadd (%p4206_p8), %s3656_s25, 4294967168  ;;  %s5036_s29 = sld [smem:[#allocation15_spill]]  ;;  %p26_p5 = scmp.ge.s32.totalorder %s4682_s19, 4  }
 0xa77   : > { %s5037_s15 = sld [smem:[#allocation16_spill]]  ;;  %s5038_s13 = smov %s4574_s14 }
 0xa78   : > { %s5040_s16 = smov %s4682_s19  ;;  %28 = sbr.rel (!%p26_p5) target bundleno = 7 (0x7), region = 121 }
 0xa7c   : > { %s5039_s14 = smov %s5036_s29 }
 0xa7d   :  { %3661 = vsyncpa [#allocation3], 1 }
 0xa7e   :  { %3663 = vsyncpa [#allocation3 + $0x1], 1 }
 0xa7f   :  { %3664 = vsyncpa [#allocation6], 1 }
 0xa80   :  { %3665 = vsyncpa [#allocation4], 1 }
 0xa81   :  { %3667 = vsyncpa [#allocation4 + $0x1], 1 }
 0xa82   :  { %3668 = vsyncpa [#allocation10], 1 }
 0xa83   :  { %3670 = vsyncpa [#allocation10 + $0x1], 1 }

</bundles_post_ra>
